<compile_context>
chip_gen: v7x
topology: tpu7x:2x2x1
jax: 0.10.0
libtpu: 0.0.40
codegen_flags: <defaults>
</compile_context>

<pallas_src>
import functools

import jax
import jax.numpy as jnp
from jax.experimental import pallas as pl
from jax.experimental.pallas import tpu as pltpu


def _lsannc_kernel(x_ref,        # (b_blk*T, in_dim)  flattened batch block
                   nodes_ref,    # (L, D)             label embeddings
                   keys_t_ref,   # (H, L)             hoisted lssa keys, pre-transposed
                   wp_t_ref,     # (in_dim, 2D)       x_projection weight, pre-transposed
                   bp_ref,       # (1, 2D)
                   w1_t_ref,     # (2D, H)            lssa.linear_first weight, pre-transposed
                   b1_ref,       # (1, H)
                   wf1_ref,      # (1, 2D)            dwf branch-0 weight row
                   wf2_ref,      # (1, 2D)            dwf branch-1 weight row
                   bf_ref,       # (2,) f32 in SMEM   [dwf bias 0, dwf bias 1]
                   out_ref,      # (b_blk, L, 2D)  or (b_blk, L*2D) when flatten_out
                   *, node_dim, seq_len, b_blk, flatten_out):
    D = node_dim
    T = seq_len

    nodes = nodes_ref[...].astype(jnp.float32)            # (L, D)
    wf1 = wf1_ref[...].astype(jnp.float32)                # (1, 2D)
    wf2 = wf2_ref[...].astype(jnp.float32)                # (1, 2D)
    bf1 = bf_ref[0]
    bf2 = bf_ref[1]

    # ---- weight-sharing matmuls over the whole (b_blk*T) row block (tall MXU M) ----
    x = x_ref[...].astype(jnp.float32)                    # (b_blk*T, in_dim)
    xp = jnp.dot(x, wp_t_ref[...],
                 preferred_element_type=jnp.float32) + bp_ref[...]          # (b_blk*T, 2D)
    att = jnp.tanh(jnp.dot(xp, w1_t_ref[...],
                           preferred_element_type=jnp.float32) + b1_ref[...])  # (b_blk*T, H)
    scores = jnp.dot(att, keys_t_ref[...],
                     preferred_element_type=jnp.float32)                    # (b_blk*T, L)

    # ---- per-example attention / fusion (batch-specific activations) ----
    for b in range(b_blk):                                 # static, b_blk is small
        xp_b = xp[b * T:(b + 1) * T, :]                    # (T, 2D)
        sc_b = scores[b * T:(b + 1) * T, :]                # (T, L)

        # NC_LabelSpecificSelfAttention: softmax over the sequence axis.
        sc_b = sc_b - jnp.max(sc_b, axis=0, keepdims=True)
        e = jnp.exp(sc_b)
        probs = e / jnp.sum(e, axis=0, keepdims=True)                        # (T, L)
        i_rep = jnp.dot(probs.T, xp_b, preferred_element_type=jnp.float32)   # (L, 2D)

        # SplitWrapper(node_dim, NC_LabelSelfAttention): softmax over lanes (T).
        def label_attention(h):                            # h: (T, D)
            s = jnp.dot(nodes, h.T, preferred_element_type=jnp.float32)      # (L, T)
            s = s - jnp.max(s, axis=-1, keepdims=True)
            es = jnp.exp(s)
            a = es / jnp.sum(es, axis=-1, keepdims=True)
            return jnp.dot(a, h, preferred_element_type=jnp.float32)         # (L, D)

        l_rep = jnp.concatenate([label_attention(xp_b[:, :D]),
                                 label_attention(xp_b[:, D:])], axis=-1)     # (L, 2D)

        # DynamicWeightedFusion: VPU multiply + lane reduce (no N=1 MXU matmul),
        # EUP approx reciprocal for the weight normalization.
        w_l = jax.nn.sigmoid(jnp.sum(l_rep * wf1, axis=-1, keepdims=True) + bf1)  # (L, 1)
        w_i = jax.nn.sigmoid(jnp.sum(i_rep * wf2, axis=-1, keepdims=True) + bf2)  # (L, 1)
        inv = pl.reciprocal(w_l + w_i, approx=True)
        d_b = (w_l * inv) * l_rep + (w_i * inv) * i_rep                           # (L, 2D)

        if flatten_out:
            # Lane-dense (L*2D) row so the store is not a <128-lane masked vst.
            out_ref[b] = d_b.reshape(-1).astype(out_ref.dtype)
        else:
            out_ref[b] = d_b.astype(out_ref.dtype)


def _pick_batch_block(batch, requested):
    """Largest divisor of `batch` <= requested, keeping >=2 grid steps when batch >= 2
    so the parallel grid axis can shard across v7x's two TensorCores."""
    cap = max(1, min(requested, batch if batch < 2 else batch // 2))
    blk = 1
    for c in range(1, cap + 1):
        if batch % c == 0:
            blk = c
    return blk


def lsannc_forward(x, nodes, params, *, batch_block=8):
    """Full LSANNC forward pass; the grid iterates over blocks of batch elements.

    For large shapes, size `batch_block` against VMEM (x block is double-buffered:
    2 * b_blk * T * in_dim * 4B, plus resident weights); v7x has 64 MiB physical VMEM
    vs 128 MiB on v5e/v6e — raise pltpu.CompilerParams(vmem_limit_bytes=...) if needed.
    """
    B, T, in_dim = x.shape
    L, D = nodes.shape
    out_dim = 2 * D
    H = params["w1"].shape[0]

    b_blk = _pick_batch_block(B, batch_block)
    grid = (B // b_blk,)
    f32 = jnp.float32

    # Hoisted, batch-invariant preprocessing (one-time layout plumbing in XLA):
    #  * weights stored (in_features, out_features) so the kernel never transposes,
    #  * lssa label keys computed once and passed pre-transposed.
    wp_t = params["wp"].T.astype(f32)                                       # (in_dim, 2D)
    w1_t = params["w1"].T.astype(f32)                                       # (2D, H)
    keys_t = (nodes.astype(f32) @ params["w2"].T.astype(f32)
              + params["b2"].astype(f32)).T                                 # (H, L)
    bp = params["bp"].astype(f32)                                           # (1, 2D)
    b1 = params["b1"].astype(f32)                                           # (1, H)
    wf1 = params["wf1"].astype(f32)                                         # (1, 2D)
    wf2 = params["wf2"].astype(f32)                                         # (1, 2D)
    bf = jnp.concatenate([params["bf1"].reshape(-1),
                          params["bf2"].reshape(-1)]).astype(f32)           # (2,)

    # Free HBM-level reshape so the kernel's weight-sharing matmuls need no
    # in-kernel dimension merging.
    x_flat = x.reshape(B * T, in_dim)

    flatten_out = (out_dim % 128) != 0
    if flatten_out:
        out_shape = jax.ShapeDtypeStruct((B, L * out_dim), x.dtype)
        out_spec = pl.BlockSpec((b_blk, L * out_dim), lambda i: (i, 0))
    else:
        out_shape = jax.ShapeDtypeStruct((B, L, out_dim), x.dtype)
        out_spec = pl.BlockSpec((b_blk, L, out_dim), lambda i: (i, 0, 0))

    def const(shape):
        n = len(shape)
        return pl.BlockSpec(shape, lambda i, _n=n: (0,) * _n)

    kernel = functools.partial(_lsannc_kernel, node_dim=D, seq_len=T,
                               b_blk=b_blk, flatten_out=flatten_out)
    out = pl.pallas_call(
        kernel,
        out_shape=out_shape,
        grid_spec=pltpu.PrefetchScalarGridSpec(
            num_scalar_prefetch=0,
            grid=grid,
            in_specs=[
                pl.BlockSpec((b_blk * T, in_dim), lambda i: (i, 0)),   # x block
                const((L, D)),                                          # nodes
                const((H, L)),                                          # keys_t (hoisted)
                const((in_dim, out_dim)),                               # wp_t
                const((1, out_dim)),                                    # bp
                const((out_dim, H)),                                    # w1_t
                const((1, H)),                                          # b1
                const((1, out_dim)),                                    # wf1
                const((1, out_dim)),                                    # wf2
                pl.BlockSpec(memory_space=pltpu.MemorySpace.SMEM),      # dwf biases
            ],
            out_specs=out_spec,
        ),
        compiler_params=pltpu.CompilerParams(
            dimension_semantics=("parallel",),
        ),
    )(x_flat, nodes, keys_t, wp_t, bp, w1_t, b1, wf1, wf2, bf)

    return out.reshape(B, L, out_dim) if flatten_out else out


def lsannc_reference(x, nodes, params):
    """Pure-JAX reference with identical math, for correctness checking."""
    D = nodes.shape[-1]
    xp = jnp.einsum("bti,oi->bto", x, params["wp"]) + params["bp"][0]
    att = jnp.tanh(jnp.einsum("btd,hd->bth", xp, params["w1"]) + params["b1"][0])
    keys = nodes @ params["w2"].T + params["b2"][0]
    probs = jax.nn.softmax(jnp.einsum("bth,lh->btl", att, keys), axis=1)
    i_rep = jnp.einsum("btl,btd->bld", probs, xp)

    def lab(h):
        a = jax.nn.softmax(jnp.einsum("ld,btd->blt", nodes, h), axis=-1)
        return jnp.einsum("blt,btd->bld", a, h)

    l_rep = jnp.concatenate([lab(xp[..., :D]), lab(xp[..., D:])], axis=-1)
    w_l = jax.nn.sigmoid(jnp.einsum("bld,od->blo", l_rep, params["wf1"]) + params["bf1"][0])
    w_i = jax.nn.sigmoid(jnp.einsum("bld,od->blo", i_rep, params["wf2"]) + params["bf2"][0])
    s = w_l + w_i
    return (w_l / s) * l_rep + (w_i / s) * i_rep


if __name__ == "__main__":
    # Small but TPU-friendly shapes: lane-sized feature dims (in_dim=128, 2*node_dim=128,
    # hidden=128) so every load/store is unmasked, T a multiple of 8, and B=4 so the
    # batch-blocked grid still has 2 parallel steps (dual-TC v7x).
    B, T, in_dim = 4, 16, 128
    node_dim, L, hidden = 64, 16, 128

    key = jax.random.PRNGKey(0)
    keys = jax.random.split(key, 8)

    def linear_params(k, out_f, in_f):
        kw, kb = jax.random.split(k)
        bound = 1.0 / (in_f ** 0.5)
        w = jax.random.uniform(kw, (out_f, in_f), jnp.float32, -bound, bound)
        b = jax.random.uniform(kb, (1, out_f), jnp.float32, -bound, bound)
        return w, b

    wp, bp = linear_params(keys[0], 2 * node_dim, in_dim)       # x_projection
    w1, b1 = linear_params(keys[1], hidden, 2 * node_dim)       # lssa.linear_first
    w2, b2 = linear_params(keys[2], hidden, node_dim)           # lssa.linear_second
    wf1, bf1 = linear_params(keys[3], 1, 2 * node_dim)          # dwf branch 0 (label att)
    wf2, bf2 = linear_params(keys[4], 1, 2 * node_dim)          # dwf branch 1 (self att)
    params = dict(wp=wp, bp=bp, w1=w1, b1=b1, w2=w2, b2=b2,
                  wf1=wf1, bf1=bf1, wf2=wf2, bf2=bf2)

    x = jax.random.normal(keys[5], (B, T, in_dim), jnp.float32)
    nodes = jax.random.normal(keys[6], (L, node_dim), jnp.float32)

    out = jax.block_until_ready(lsannc_forward(x, nodes, params))
    ref = lsannc_reference(x, nodes, params)

    assert out.shape == (B, L, 2 * node_dim), out.shape
    # Tolerance covers the EUP approx-reciprocal used in the fusion normalization.
    if not bool(jnp.allclose(out, ref, atol=2e-3, rtol=2e-3)):
        raise SystemExit("kernel/reference mismatch")
    print("KERNEL_OK")
</pallas_src>

<mosaic_0001>
module attributes {stable_mosaic.version = 11 : i64} {
  func.func @_lsannc_kernel(%arg0: i32, %arg1: memref<32x128xf32, #tpu.memory_space<vmem>>, %arg2: memref<16x64xf32, #tpu.memory_space<vmem>>, %arg3: memref<128x16xf32, #tpu.memory_space<vmem>>, %arg4: memref<128x128xf32, #tpu.memory_space<vmem>>, %arg5: memref<1x128xf32, #tpu.memory_space<vmem>>, %arg6: memref<128x128xf32, #tpu.memory_space<vmem>>, %arg7: memref<1x128xf32, #tpu.memory_space<vmem>>, %arg8: memref<1x128xf32, #tpu.memory_space<vmem>>, %arg9: memref<1x128xf32, #tpu.memory_space<vmem>>, %arg10: memref<2xf32, #tpu.memory_space<smem>>, %arg11: memref<2x16x128xf32, #tpu.memory_space<vmem>>) attributes {dimension_semantics = [#tpu.dimension_semantics<parallel>], iteration_bounds = array<i64: 2>, scalar_prefetch = 0 : i64, scratch_operands = 0 : i64, tpu.core_type = #tpu.core_type<tc>, window_params = [{transform_indices = @transform_0, window_bounds = array<i64: 32, 128>}, {pipeline_mode = #tpu.pipeline_mode<synchronous>, transform_indices = @transform_1, window_bounds = array<i64: 16, 64>}, {pipeline_mode = #tpu.pipeline_mode<synchronous>, transform_indices = @transform_2, window_bounds = array<i64: 128, 16>}, {pipeline_mode = #tpu.pipeline_mode<synchronous>, transform_indices = @transform_3, window_bounds = array<i64: 128, 128>}, {pipeline_mode = #tpu.pipeline_mode<synchronous>, transform_indices = @transform_4, window_bounds = array<i64: 1, 128>}, {pipeline_mode = #tpu.pipeline_mode<synchronous>, transform_indices = @transform_5, window_bounds = array<i64: 128, 128>}, {pipeline_mode = #tpu.pipeline_mode<synchronous>, transform_indices = @transform_6, window_bounds = array<i64: 1, 128>}, {pipeline_mode = #tpu.pipeline_mode<synchronous>, transform_indices = @transform_7, window_bounds = array<i64: 1, 128>}, {pipeline_mode = #tpu.pipeline_mode<synchronous>, transform_indices = @transform_8, window_bounds = array<i64: 1, 128>}, {transform_indices = @transform_9, window_bounds = array<i64: 2>}, {transform_indices = @transform_10, window_bounds = array<i64: 2, 16, 128>}]} {
    %c0 = arith.constant 0 : index
    %c0_0 = arith.constant 0 : index
    %0 = vector.load %arg2[%c0, %c0_0] : memref<16x64xf32, #tpu.memory_space<vmem>>, vector<16x64xf32>
    %c0_1 = arith.constant 0 : index
    %c0_2 = arith.constant 0 : index
    %1 = vector.load %arg8[%c0_1, %c0_2] : memref<1x128xf32, #tpu.memory_space<vmem>>, vector<1x128xf32>
    %c0_3 = arith.constant 0 : index
    %c0_4 = arith.constant 0 : index
    %2 = vector.load %arg9[%c0_3, %c0_4] : memref<1x128xf32, #tpu.memory_space<vmem>>, vector<1x128xf32>
    %c0_5 = arith.constant 0 : index
    %3 = memref.load %arg10[%c0_5] : memref<2xf32, #tpu.memory_space<smem>>
    %c1 = arith.constant 1 : index
    %4 = memref.load %arg10[%c1] : memref<2xf32, #tpu.memory_space<smem>>
    %c0_6 = arith.constant 0 : index
    %c0_7 = arith.constant 0 : index
    %5 = vector.load %arg1[%c0_6, %c0_7] : memref<32x128xf32, #tpu.memory_space<vmem>>, vector<32x128xf32>
    %c0_8 = arith.constant 0 : index
    %c0_9 = arith.constant 0 : index
    %6 = vector.load %arg4[%c0_8, %c0_9] : memref<128x128xf32, #tpu.memory_space<vmem>>, vector<128x128xf32>
    %cst = arith.constant dense<0.000000e+00> : vector<32x128xf32>
    %7 = tpu.matmul %5, %6, %cst {dimension_numbers = #tpu.dot_dimension_numbers<[1], [0], [0], [1], [0, 0, 1, 1], [], []>} : vector<32x128xf32>, vector<128x128xf32>, vector<32x128xf32> -> vector<32x128xf32>
    %c0_10 = arith.constant 0 : index
    %c0_11 = arith.constant 0 : index
    %8 = vector.load %arg5[%c0_10, %c0_11] : memref<1x128xf32, #tpu.memory_space<vmem>>, vector<1x128xf32>
    %9 = vector.broadcast %8 : vector<1x128xf32> to vector<32x128xf32>
    %10 = arith.addf %7, %9 : vector<32x128xf32>
    %c0_12 = arith.constant 0 : index
    %c0_13 = arith.constant 0 : index
    %11 = vector.load %arg6[%c0_12, %c0_13] : memref<128x128xf32, #tpu.memory_space<vmem>>, vector<128x128xf32>
    %cst_14 = arith.constant dense<0.000000e+00> : vector<32x128xf32>
    %12 = tpu.matmul %10, %11, %cst_14 {dimension_numbers = #tpu.dot_dimension_numbers<[1], [0], [0], [1], [0, 0, 1, 1], [], []>} : vector<32x128xf32>, vector<128x128xf32>, vector<32x128xf32> -> vector<32x128xf32>
    %c0_15 = arith.constant 0 : index
    %c0_16 = arith.constant 0 : index
    %13 = vector.load %arg7[%c0_15, %c0_16] : memref<1x128xf32, #tpu.memory_space<vmem>>, vector<1x128xf32>
    %14 = vector.broadcast %13 : vector<1x128xf32> to vector<32x128xf32>
    %15 = arith.addf %12, %14 : vector<32x128xf32>
    %16 = math.tanh %15 : vector<32x128xf32>
    %c0_17 = arith.constant 0 : index
    %c0_18 = arith.constant 0 : index
    %17 = vector.load %arg3[%c0_17, %c0_18] : memref<128x16xf32, #tpu.memory_space<vmem>>, vector<128x16xf32>
    %cst_19 = arith.constant dense<0.000000e+00> : vector<32x16xf32>
    %18 = tpu.matmul %16, %17, %cst_19 {dimension_numbers = #tpu.dot_dimension_numbers<[1], [0], [0], [1], [0, 0, 1, 1], [], []>} : vector<32x128xf32>, vector<128x16xf32>, vector<32x16xf32> -> vector<32x16xf32>
    %19 = vector.extract_strided_slice %10 {offsets = [0, 0], sizes = [16, 128], strides = [1, 1]} : vector<32x128xf32> to vector<16x128xf32>
    %20 = vector.extract_strided_slice %18 {offsets = [0, 0], sizes = [16, 16], strides = [1, 1]} : vector<32x16xf32> to vector<16x16xf32>
    %cst_20 = arith.constant dense<0xFF800000> : vector<16xf32>
    %21 = vector.multi_reduction <maximumf>, %20, %cst_20 [0] : vector<16x16xf32> to vector<16xf32>
    %22 = vector.shape_cast %21 : vector<16xf32> to vector<1x16xf32>
    %23 = vector.broadcast %22 : vector<1x16xf32> to vector<16x16xf32>
    %24 = arith.subf %20, %23 : vector<16x16xf32>
    %25 = math.exp %24 : vector<16x16xf32>
    %cst_21 = arith.constant dense<0.000000e+00> : vector<16xf32>
    %26 = vector.multi_reduction <add>, %25, %cst_21 [0] : vector<16x16xf32> to vector<16xf32>
    %27 = vector.shape_cast %26 : vector<16xf32> to vector<1x16xf32>
    %28 = vector.broadcast %27 : vector<1x16xf32> to vector<16x16xf32>
    %29 = arith.divf %25, %28 : vector<16x16xf32>
    %30 = tpu.transpose %29, [1, 0] : vector<16x16xf32> -> vector<16x16xf32>
    %cst_22 = arith.constant dense<0.000000e+00> : vector<16x128xf32>
    %31 = tpu.matmul %30, %19, %cst_22 {dimension_numbers = #tpu.dot_dimension_numbers<[1], [0], [0], [1], [0, 0, 1, 1], [], []>} : vector<16x16xf32>, vector<16x128xf32>, vector<16x128xf32> -> vector<16x128xf32>
    %32 = vector.extract_strided_slice %19 {offsets = [0, 0], sizes = [16, 64], strides = [1, 1]} : vector<16x128xf32> to vector<16x64xf32>
    %33 = tpu.transpose %32, [1, 0] : vector<16x64xf32> -> vector<64x16xf32>
    %cst_23 = arith.constant dense<0.000000e+00> : vector<16x16xf32>
    %34 = tpu.matmul %0, %33, %cst_23 {dimension_numbers = #tpu.dot_dimension_numbers<[1], [0], [0], [1], [0, 0, 1, 1], [], []>} : vector<16x64xf32>, vector<64x16xf32>, vector<16x16xf32> -> vector<16x16xf32>
    %cst_24 = arith.constant dense<0xFF800000> : vector<16xf32>
    %35 = vector.multi_reduction <maximumf>, %34, %cst_24 [1] : vector<16x16xf32> to vector<16xf32>
    %36 = vector.shape_cast %35 : vector<16xf32> to vector<16x1xf32>
    %37 = vector.broadcast %36 : vector<16x1xf32> to vector<16x16xf32>
    %38 = arith.subf %34, %37 : vector<16x16xf32>
    %39 = math.exp %38 : vector<16x16xf32>
    %cst_25 = arith.constant dense<0.000000e+00> : vector<16xf32>
    %40 = vector.multi_reduction <add>, %39, %cst_25 [1] : vector<16x16xf32> to vector<16xf32>
    %41 = vector.shape_cast %40 : vector<16xf32> to vector<16x1xf32>
    %42 = vector.broadcast %41 : vector<16x1xf32> to vector<16x16xf32>
    %43 = arith.divf %39, %42 : vector<16x16xf32>
    %cst_26 = arith.constant dense<0.000000e+00> : vector<16x64xf32>
    %44 = tpu.matmul %43, %32, %cst_26 {dimension_numbers = #tpu.dot_dimension_numbers<[1], [0], [0], [1], [0, 0, 1, 1], [], []>} : vector<16x16xf32>, vector<16x64xf32>, vector<16x64xf32> -> vector<16x64xf32>
    %45 = vector.extract_strided_slice %19 {offsets = [0, 64], sizes = [16, 64], strides = [1, 1]} : vector<16x128xf32> to vector<16x64xf32>
    %46 = tpu.transpose %45, [1, 0] : vector<16x64xf32> -> vector<64x16xf32>
    %cst_27 = arith.constant dense<0.000000e+00> : vector<16x16xf32>
    %47 = tpu.matmul %0, %46, %cst_27 {dimension_numbers = #tpu.dot_dimension_numbers<[1], [0], [0], [1], [0, 0, 1, 1], [], []>} : vector<16x64xf32>, vector<64x16xf32>, vector<16x16xf32> -> vector<16x16xf32>
    %cst_28 = arith.constant dense<0xFF800000> : vector<16xf32>
    %48 = vector.multi_reduction <maximumf>, %47, %cst_28 [1] : vector<16x16xf32> to vector<16xf32>
    %49 = vector.shape_cast %48 : vector<16xf32> to vector<16x1xf32>
    %50 = vector.broadcast %49 : vector<16x1xf32> to vector<16x16xf32>
    %51 = arith.subf %47, %50 : vector<16x16xf32>
    %52 = math.exp %51 : vector<16x16xf32>
    %cst_29 = arith.constant dense<0.000000e+00> : vector<16xf32>
    %53 = vector.multi_reduction <add>, %52, %cst_29 [1] : vector<16x16xf32> to vector<16xf32>
    %54 = vector.shape_cast %53 : vector<16xf32> to vector<16x1xf32>
    %55 = vector.broadcast %54 : vector<16x1xf32> to vector<16x16xf32>
    %56 = arith.divf %52, %55 : vector<16x16xf32>
    %cst_30 = arith.constant dense<0.000000e+00> : vector<16x64xf32>
    %57 = tpu.matmul %56, %45, %cst_30 {dimension_numbers = #tpu.dot_dimension_numbers<[1], [0], [0], [1], [0, 0, 1, 1], [], []>} : vector<16x16xf32>, vector<16x64xf32>, vector<16x64xf32> -> vector<16x64xf32>
    %58 = tpu.concatenate %44, %57 in 1 : vector<16x64xf32>, vector<16x64xf32> -> vector<16x128xf32>
    %59 = vector.broadcast %1 : vector<1x128xf32> to vector<16x128xf32>
    %60 = arith.mulf %58, %59 : vector<16x128xf32>
    %cst_31 = arith.constant dense<0.000000e+00> : vector<16xf32>
    %61 = vector.multi_reduction <add>, %60, %cst_31 [1] : vector<16x128xf32> to vector<16xf32>
    %62 = vector.shape_cast %61 : vector<16xf32> to vector<16x1xf32>
    %63 = vector.broadcast %3 : f32 to vector<16x1xf32>
    %64 = arith.addf %62, %63 : vector<16x1xf32>
    %65 = arith.negf %64 : vector<16x1xf32>
    %66 = math.exp %65 : vector<16x1xf32>
    %cst_32 = arith.constant 1.000000e+00 : f32
    %67 = vector.broadcast %cst_32 : f32 to vector<16x1xf32>
    %68 = arith.addf %67, %66 : vector<16x1xf32>
    %69 = arith.divf %67, %68 : vector<16x1xf32>
    %70 = vector.broadcast %2 : vector<1x128xf32> to vector<16x128xf32>
    %71 = arith.mulf %31, %70 : vector<16x128xf32>
    %cst_33 = arith.constant dense<0.000000e+00> : vector<16xf32>
    %72 = vector.multi_reduction <add>, %71, %cst_33 [1] : vector<16x128xf32> to vector<16xf32>
    %73 = vector.shape_cast %72 : vector<16xf32> to vector<16x1xf32>
    %74 = vector.broadcast %4 : f32 to vector<16x1xf32>
    %75 = arith.addf %73, %74 : vector<16x1xf32>
    %76 = arith.negf %75 : vector<16x1xf32>
    %77 = math.exp %76 : vector<16x1xf32>
    %cst_34 = arith.constant 1.000000e+00 : f32
    %78 = vector.broadcast %cst_34 : f32 to vector<16x1xf32>
    %79 = arith.addf %78, %77 : vector<16x1xf32>
    %80 = arith.divf %78, %79 : vector<16x1xf32>
    %81 = arith.addf %69, %80 : vector<16x1xf32>
    %82 = tpu.reciprocal %81 {approx = true} : vector<16x1xf32> -> vector<16x1xf32>
    %83 = arith.mulf %69, %82 : vector<16x1xf32>
    %84 = vector.broadcast %83 : vector<16x1xf32> to vector<16x128xf32>
    %85 = arith.mulf %84, %58 : vector<16x128xf32>
    %86 = arith.mulf %80, %82 : vector<16x1xf32>
    %87 = vector.broadcast %86 : vector<16x1xf32> to vector<16x128xf32>
    %88 = arith.mulf %87, %31 : vector<16x128xf32>
    %89 = arith.addf %85, %88 : vector<16x128xf32>
    %c0_35 = arith.constant 0 : index
    %c0_36 = arith.constant 0 : index
    %c0_37 = arith.constant 0 : index
    %90 = vector.load %arg11[%c0_35, %c0_36, %c0_37] : memref<2x16x128xf32, #tpu.memory_space<vmem>>, vector<1x16x128xf32>
    %91 = vector.shape_cast %90 : vector<1x16x128xf32> to vector<16x128xf32>
    %92 = vector.shape_cast %89 : vector<16x128xf32> to vector<1x16x128xf32>
    tpu.vector_store %arg11[%c0_35, %c0_36, %c0_37], %92 {strides = array<i32>} : memref<2x16x128xf32, #tpu.memory_space<vmem>>, vector<1x16x128xf32>,
    %93 = vector.extract_strided_slice %10 {offsets = [16, 0], sizes = [16, 128], strides = [1, 1]} : vector<32x128xf32> to vector<16x128xf32>
    %94 = vector.extract_strided_slice %18 {offsets = [16, 0], sizes = [16, 16], strides = [1, 1]} : vector<32x16xf32> to vector<16x16xf32>
    %cst_38 = arith.constant dense<0xFF800000> : vector<16xf32>
    %95 = vector.multi_reduction <maximumf>, %94, %cst_38 [0] : vector<16x16xf32> to vector<16xf32>
    %96 = vector.shape_cast %95 : vector<16xf32> to vector<1x16xf32>
    %97 = vector.broadcast %96 : vector<1x16xf32> to vector<16x16xf32>
    %98 = arith.subf %94, %97 : vector<16x16xf32>
    %99 = math.exp %98 : vector<16x16xf32>
    %cst_39 = arith.constant dense<0.000000e+00> : vector<16xf32>
    %100 = vector.multi_reduction <add>, %99, %cst_39 [0] : vector<16x16xf32> to vector<16xf32>
    %101 = vector.shape_cast %100 : vector<16xf32> to vector<1x16xf32>
    %102 = vector.broadcast %101 : vector<1x16xf32> to vector<16x16xf32>
    %103 = arith.divf %99, %102 : vector<16x16xf32>
    %104 = tpu.transpose %103, [1, 0] : vector<16x16xf32> -> vector<16x16xf32>
    %cst_40 = arith.constant dense<0.000000e+00> : vector<16x128xf32>
    %105 = tpu.matmul %104, %93, %cst_40 {dimension_numbers = #tpu.dot_dimension_numbers<[1], [0], [0], [1], [0, 0, 1, 1], [], []>} : vector<16x16xf32>, vector<16x128xf32>, vector<16x128xf32> -> vector<16x128xf32>
    %106 = vector.extract_strided_slice %93 {offsets = [0, 0], sizes = [16, 64], strides = [1, 1]} : vector<16x128xf32> to vector<16x64xf32>
    %107 = tpu.transpose %106, [1, 0] : vector<16x64xf32> -> vector<64x16xf32>
    %cst_41 = arith.constant dense<0.000000e+00> : vector<16x16xf32>
    %108 = tpu.matmul %0, %107, %cst_41 {dimension_numbers = #tpu.dot_dimension_numbers<[1], [0], [0], [1], [0, 0, 1, 1], [], []>} : vector<16x64xf32>, vector<64x16xf32>, vector<16x16xf32> -> vector<16x16xf32>
    %cst_42 = arith.constant dense<0xFF800000> : vector<16xf32>
    %109 = vector.multi_reduction <maximumf>, %108, %cst_42 [1] : vector<16x16xf32> to vector<16xf32>
    %110 = vector.shape_cast %109 : vector<16xf32> to vector<16x1xf32>
    %111 = vector.broadcast %110 : vector<16x1xf32> to vector<16x16xf32>
    %112 = arith.subf %108, %111 : vector<16x16xf32>
    %113 = math.exp %112 : vector<16x16xf32>
    %cst_43 = arith.constant dense<0.000000e+00> : vector<16xf32>
    %114 = vector.multi_reduction <add>, %113, %cst_43 [1] : vector<16x16xf32> to vector<16xf32>
    %115 = vector.shape_cast %114 : vector<16xf32> to vector<16x1xf32>
    %116 = vector.broadcast %115 : vector<16x1xf32> to vector<16x16xf32>
    %117 = arith.divf %113, %116 : vector<16x16xf32>
    %cst_44 = arith.constant dense<0.000000e+00> : vector<16x64xf32>
    %118 = tpu.matmul %117, %106, %cst_44 {dimension_numbers = #tpu.dot_dimension_numbers<[1], [0], [0], [1], [0, 0, 1, 1], [], []>} : vector<16x16xf32>, vector<16x64xf32>, vector<16x64xf32> -> vector<16x64xf32>
    %119 = vector.extract_strided_slice %93 {offsets = [0, 64], sizes = [16, 64], strides = [1, 1]} : vector<16x128xf32> to vector<16x64xf32>
    %120 = tpu.transpose %119, [1, 0] : vector<16x64xf32> -> vector<64x16xf32>
    %cst_45 = arith.constant dense<0.000000e+00> : vector<16x16xf32>
    %121 = tpu.matmul %0, %120, %cst_45 {dimension_numbers = #tpu.dot_dimension_numbers<[1], [0], [0], [1], [0, 0, 1, 1], [], []>} : vector<16x64xf32>, vector<64x16xf32>, vector<16x16xf32> -> vector<16x16xf32>
    %cst_46 = arith.constant dense<0xFF800000> : vector<16xf32>
    %122 = vector.multi_reduction <maximumf>, %121, %cst_46 [1] : vector<16x16xf32> to vector<16xf32>
    %123 = vector.shape_cast %122 : vector<16xf32> to vector<16x1xf32>
    %124 = vector.broadcast %123 : vector<16x1xf32> to vector<16x16xf32>
    %125 = arith.subf %121, %124 : vector<16x16xf32>
    %126 = math.exp %125 : vector<16x16xf32>
    %cst_47 = arith.constant dense<0.000000e+00> : vector<16xf32>
    %127 = vector.multi_reduction <add>, %126, %cst_47 [1] : vector<16x16xf32> to vector<16xf32>
    %128 = vector.shape_cast %127 : vector<16xf32> to vector<16x1xf32>
    %129 = vector.broadcast %128 : vector<16x1xf32> to vector<16x16xf32>
    %130 = arith.divf %126, %129 : vector<16x16xf32>
    %cst_48 = arith.constant dense<0.000000e+00> : vector<16x64xf32>
    %131 = tpu.matmul %130, %119, %cst_48 {dimension_numbers = #tpu.dot_dimension_numbers<[1], [0], [0], [1], [0, 0, 1, 1], [], []>} : vector<16x16xf32>, vector<16x64xf32>, vector<16x64xf32> -> vector<16x64xf32>
    %132 = tpu.concatenate %118, %131 in 1 : vector<16x64xf32>, vector<16x64xf32> -> vector<16x128xf32>
    %133 = vector.broadcast %1 : vector<1x128xf32> to vector<16x128xf32>
    %134 = arith.mulf %132, %133 : vector<16x128xf32>
    %cst_49 = arith.constant dense<0.000000e+00> : vector<16xf32>
    %135 = vector.multi_reduction <add>, %134, %cst_49 [1] : vector<16x128xf32> to vector<16xf32>
    %136 = vector.shape_cast %135 : vector<16xf32> to vector<16x1xf32>
    %137 = vector.broadcast %3 : f32 to vector<16x1xf32>
    %138 = arith.addf %136, %137 : vector<16x1xf32>
    %139 = arith.negf %138 : vector<16x1xf32>
    %140 = math.exp %139 : vector<16x1xf32>
    %cst_50 = arith.constant 1.000000e+00 : f32
    %141 = vector.broadcast %cst_50 : f32 to vector<16x1xf32>
    %142 = arith.addf %141, %140 : vector<16x1xf32>
    %143 = arith.divf %141, %142 : vector<16x1xf32>
    %144 = vector.broadcast %2 : vector<1x128xf32> to vector<16x128xf32>
    %145 = arith.mulf %105, %144 : vector<16x128xf32>
    %cst_51 = arith.constant dense<0.000000e+00> : vector<16xf32>
    %146 = vector.multi_reduction <add>, %145, %cst_51 [1] : vector<16x128xf32> to vector<16xf32>
    %147 = vector.shape_cast %146 : vector<16xf32> to vector<16x1xf32>
    %148 = vector.broadcast %4 : f32 to vector<16x1xf32>
    %149 = arith.addf %147, %148 : vector<16x1xf32>
    %150 = arith.negf %149 : vector<16x1xf32>
    %151 = math.exp %150 : vector<16x1xf32>
    %cst_52 = arith.constant 1.000000e+00 : f32
    %152 = vector.broadcast %cst_52 : f32 to vector<16x1xf32>
    %153 = arith.addf %152, %151 : vector<16x1xf32>
    %154 = arith.divf %152, %153 : vector<16x1xf32>
    %155 = arith.addf %143, %154 : vector<16x1xf32>
    %156 = tpu.reciprocal %155 {approx = true} : vector<16x1xf32> -> vector<16x1xf32>
    %157 = arith.mulf %143, %156 : vector<16x1xf32>
    %158 = vector.broadcast %157 : vector<16x1xf32> to vector<16x128xf32>
    %159 = arith.mulf %158, %132 : vector<16x128xf32>
    %160 = arith.mulf %154, %156 : vector<16x1xf32>
    %161 = vector.broadcast %160 : vector<16x1xf32> to vector<16x128xf32>
    %162 = arith.mulf %161, %105 : vector<16x128xf32>
    %163 = arith.addf %159, %162 : vector<16x128xf32>
    %c1_53 = arith.constant 1 : index
    %c0_54 = arith.constant 0 : index
    %c0_55 = arith.constant 0 : index
    %164 = vector.load %arg11[%c1_53, %c0_54, %c0_55] : memref<2x16x128xf32, #tpu.memory_space<vmem>>, vector<1x16x128xf32>
    %165 = vector.shape_cast %164 : vector<1x16x128xf32> to vector<16x128xf32>
    %166 = vector.shape_cast %163 : vector<16x128xf32> to vector<1x16x128xf32>
    tpu.vector_store %arg11[%c1_53, %c0_54, %c0_55], %166 {strides = array<i32>} : memref<2x16x128xf32, #tpu.memory_space<vmem>>, vector<1x16x128xf32>,
    return
  }
  func.func @transform_0(%arg0: i32) -> (i32, i32) {
    %c0_i32 = arith.constant 0 : i32
    %c0_i32_0 = arith.constant 0 : i32
    return %arg0, %c0_i32 : i32, i32
  }
  func.func @transform_1(%arg0: i32) -> (i32, i32) {
    %c0_i32 = arith.constant 0 : i32
    %c0_i32_0 = arith.constant 0 : i32
    %c0_i32_1 = arith.constant 0 : i32
    return %c0_i32, %c0_i32_0 : i32, i32
  }
  func.func @transform_2(%arg0: i32) -> (i32, i32) {
    %c0_i32 = arith.constant 0 : i32
    %c0_i32_0 = arith.constant 0 : i32
    %c0_i32_1 = arith.constant 0 : i32
    return %c0_i32, %c0_i32_0 : i32, i32
  }
  func.func @transform_3(%arg0: i32) -> (i32, i32) {
    %c0_i32 = arith.constant 0 : i32
    %c0_i32_0 = arith.constant 0 : i32
    %c0_i32_1 = arith.constant 0 : i32
    return %c0_i32, %c0_i32_0 : i32, i32
  }
  func.func @transform_4(%arg0: i32) -> (i32, i32) {
    %c0_i32 = arith.constant 0 : i32
    %c0_i32_0 = arith.constant 0 : i32
    %c0_i32_1 = arith.constant 0 : i32
    return %c0_i32, %c0_i32_0 : i32, i32
  }
  func.func @transform_5(%arg0: i32) -> (i32, i32) {
    %c0_i32 = arith.constant 0 : i32
    %c0_i32_0 = arith.constant 0 : i32
    %c0_i32_1 = arith.constant 0 : i32
    return %c0_i32, %c0_i32_0 : i32, i32
  }
  func.func @transform_6(%arg0: i32) -> (i32, i32) {
    %c0_i32 = arith.constant 0 : i32
    %c0_i32_0 = arith.constant 0 : i32
    %c0_i32_1 = arith.constant 0 : i32
    return %c0_i32, %c0_i32_0 : i32, i32
  }
  func.func @transform_7(%arg0: i32) -> (i32, i32) {
    %c0_i32 = arith.constant 0 : i32
    %c0_i32_0 = arith.constant 0 : i32
    %c0_i32_1 = arith.constant 0 : i32
    return %c0_i32, %c0_i32_0 : i32, i32
  }
  func.func @transform_8(%arg0: i32) -> (i32, i32) {
    %c0_i32 = arith.constant 0 : i32
    %c0_i32_0 = arith.constant 0 : i32
    %c0_i32_1 = arith.constant 0 : i32
    return %c0_i32, %c0_i32_0 : i32, i32
  }
  func.func @transform_9(%arg0: i32) -> i32 {
    %c0_i32 = arith.constant 0 : i32
    %c0_i32_0 = arith.constant 0 : i32
    return %c0_i32 : i32
  }
  func.func @transform_10(%arg0: i32) -> (i32, i32, i32) {
    %c0_i32 = arith.constant 0 : i32
    %c0_i32_0 = arith.constant 0 : i32
    %c0_i32_1 = arith.constant 0 : i32
    return %arg0, %c0_i32, %c0_i32_0 : i32, i32, i32
  }
}

</mosaic_0001>

<bundles_post_ra>
// kernel: tpu_custom_call.1
= control target key start
LH: loop header
LB: loop body
LE: loop exit
PB: predicated region body
PF: predicated region fallthrough
CT: control target
= control target key end

     0   :  { %s3443_s0 = inlined_call_operand.hbm [shape: f32[64,128], index: 0, kind: input, shape index: {}]   ;;  %s3444_s1 = inlined_call_operand.vmem [shape: f32[16,64], index: 1, kind: input, shape index: {}]   ;;  %s3445_s2 = inlined_call_operand.vmem [shape: f32[128,16], index: 2, kind: input, shape index: {}]   ;;  %s3446_s3 = inlined_call_operand.vmem [shape: f32[128,128], index: 3, kind: input, shape index: {}]   ;;  %s3447_s4 = inlined_call_operand.vmem [shape: f32[1,128], index: 4, kind: input, shape index: {}]   ;;  %s3448_s5 = inlined_call_operand.hbm [shape: f32[128,128], index: 5, kind: input, shape index: {}]   ;;  %s3449_s6 = inlined_call_operand.vmem [shape: f32[1,128], index: 6, kind: input, shape index: {}]   ;;  %s3450_s7 = inlined_call_operand.vmem [shape: f32[1,128], index: 7, kind: input, shape index: {}]   ;;  %s3451_s8 = inlined_call_operand.vmem [shape: f32[1,128], index: 8, kind: input, shape index: {}]   ;;  %s3452_s9 = inlined_call_operand.vmem [shape: f32[2], index: 9, kind: input, shape index: {}]   ;;  %s3453_s10 = inlined_call_operand.hbm [shape: f32[4,16,128], index: 10, kind: output, shape index: {}]  }
   0x1   :  { %3459 = sst [smem:[#allocation14_spill]] %s3448_s5 }
   0x2   :  { %3460 = sst [smem:[#allocation15_spill]] %s3452_s9 }
   0x3   :  { %15 = vsyncpa [#allocation3], 0 }
   0x4   :  { %17 = vsyncpa [#allocation3 + $0x1], 0 }
   0x5   :  { %18 = vsyncpa [#allocation7], 0 }
   0x6   :  { %19 = vsyncpa [#allocation5], 0 }
   0x7   :  { %20 = vsyncpa [#allocation4], 0 }
   0x8   :  { %22 = vsyncpa [#allocation4 + $0x1], 0  ;;  %s2910_s13 = smov 0   ;;  %s2912_s14 = smov 0  }
   0x9   :  { %s2914_s15 = smov 0   ;;  %s2916_s16 = smov 0  }
   0xa LB: > { %s2931_s17 = sadd.s32 4294967295, %s2844_s16   ;;  %s2029_s18 = sadd.s32 4294967294, %s2844_s16   ;;  %s2844_s16 = sphi %s2916_s16, %s3485_s16   ;;  %s2840_s15 = sphi %s2914_s15, %s3484_s15   ;;  %s2836_s14 = sphi %s2912_s14, %s3483_s14   ;;  %s2832_s13 = sphi %s2910_s13, %s3482_s13  }
   0xb   : > { %p48_p0 = scmp.ne.s32.totalorder %s2836_s14, %s2832_s13  ;;  %p3454_p1 = scmp.eq.s32.totalorder %s2931_s17, 0 }
   0xc   : > { %p267_p3 = scmp.eq.s32.totalorder %s2029_s18, 1  ;;  %p2030_p5 = scmp.ge.s32.totalorder %s2844_s16, 1 }
   0xd   : > { %p2940_p4 = por %p3454_p1, %p48_p0  ;;  %p274_p7 = scmp.lt.s32.totalorder %s2844_s16, 3 }
   0xe   : > { %p2945_p6 = por %p267_p3, %p48_p0  ;;  %s2846_s22 = smov [#allocation6]  }
   0xf   : > { %s3461_s19 = scalar_select %p2940_p4, 1, 0 }
  0x10   : > { %s3462_s20 = scalar_select %p2945_p6, 1, 0 }
  0x11   : > { %p2950_p8 = pnand %p2030_p5, %p274_p7  ;;  %s298_s23 = sshll.u32 %s2846_s22, 4  ;;  %s299_s23 = int_to_ptr.vmem [resolvable:$true] %s298_s23 }
  0x12   : > { %s3464_s9 = sld [smem:[#allocation15_spill]]  ;;  %s3466_s5 = sld [smem:[#allocation14_spill]] }
  0x13   : > { %s3463_s21 = scalar_select %p2950_p8, 1, 0 }
  0x14   : > { %p2534_p9 = pneg %p2950_p8 }
  0x16   : > { %p2962_p11 = pnand %p2534_p9, %p3454_p1 }
  0x18   : > { %s321_s26 = sshll.u32 %s3464_s9, 4  ;;  %s2697_s30 = scalar_lea.hbm %s3466_s5, 2048  ;;  %s2966_s26 = int_to_ptr.vmem [resolvable:$true] %s321_s26 }
  0x19   : > { %p2698_p12 = scmp.ne.s32.totalorder %s3466_s5, %s2697_s30  ;;  %p2699_p13 = pneg %p2962_p11 }
  0x1a   : > { %p2704_p5 = scmp.lt.u32.totalorder %s2697_s30, %s3466_s5 }
  0x1b   : > { %p2700_p0 = pnand %p2699_p13, %p2698_p12 }
  0x1d   : > { %p2701_p3 = pneg %p2700_p0 }
  0x1f   : > { %p2706_p7 = pnand %p2704_p5, %p2701_p3 }
  0x21   : > { %2709 = shalt.err (!%p2706_p7)
}
  0x22   : > { %s2710_s24 = scalar_lea.vmem %s299_s23, 2048  ;;  %p2718_p2 = scmp.lt.s32.totalorder %s299_s23, %s299_s23 }
  0x23   : > { %p2711_p9 = scmp.ne.s32.totalorder %s299_s23, %s2710_s24  ;;  %p2719_p6 = scmp.lt.s32.totalorder %s2710_s24, %s2710_s24 }
  0x25   : > { %p2713_p10 = pnand %p2711_p9, %p2699_p13  ;;  %p2720_p4 = por %p2719_p6, %p2718_p2 }
  0x27   : > { %p2714_p1 = pneg %p2713_p10 }
  0x29   : > { %p2721_p8 = pnand %p2720_p4, %p2714_p1 }
  0x2b   : > { %2724 = shalt.err (!%p2721_p8)
}
  0x2c   : > { %s3457_s25 = smov 128   ;;  %s3458_s28 = smov 8  }
  0x2d   : > { %2537 = dma.hbm_to_vmem [thread:$0]  (!%p2962_p11), %s3466_s5, 2048, %s299_s23, [#allocation7], %s3457_s25, %s3457_s25, %s3458_s28  }
  0x2e   : > { %s2725_s11 = scalar_lea.vmem %s2966_s26, 16  ;;  %p2733_p4 = scmp.lt.s32.totalorder %s2966_s26, %s2966_s26 }
  0x2f   : > { %p2726_p10 = scmp.ne.s32.totalorder %s2966_s26, %s2725_s11  ;;  %p2734_p6 = scmp.lt.s32.totalorder %s2725_s11, %s2725_s11 }
  0x31   : > { %p2728_p1 = pnand %p2726_p10, %p2699_p13  ;;  %p2735_p8 = por %p2734_p6, %p2733_p4 }
  0x33   : > { %p2729_p2 = pneg %p2728_p1 }
  0x35   : > { %p2736_p12 = pnand %p2735_p8, %p2729_p2 }
  0x37   : > { %2739 = shalt.err (!%p2736_p12)
}
  0x38   : > { %s2849_s12 = smov [#allocation8]   ;;  %s3004_s23 = sadd.s32 1, %s2844_s16  }
  0x39   : > { %2540 = dma.vmem_to_smem (!%p2962_p11), %s2966_s26, 16, %s2849_s12, [#allocation5]  }
  0x3a   : > { %s35_s18 = sadd.s32 1, %s2840_s15  ;;  %s32_s22 = ssub.s32 %s2844_s16, %s3004_s23 }
  0x3b   : > { %p42_p13 = scmp.ne.s32.totalorder %s2840_s15, %s2836_s14  ;;  %p33_p0 = scmp.eq.s32.totalorder %s32_s22, 0 }
  0x3c   : > { %p43_p3 = scmp.eq.s32.totalorder %s2844_s16, 0  ;;  %p3467_p5 = scmp.eq.s32.totalorder %s2931_s17, 1 }
  0x3d   : > { %p2551_p9 = scmp.lt.s32.totalorder %s2844_s16, 2  ;;  %s332_s29 = sand.u32 1, %s2840_s15  }
  0x3e   : > { %p3014_p7 = por %p3467_p5, %p42_p13  ;;  %p44_p10 = por %p43_p3, %p42_p13 }
  0x3f   : > { %s3020_s24 = scalar_select %p33_p0, %s2840_s15, %s35_s18  }
  0x40   : > { %s2034_s30 = sshll.u32 %s332_s29, 5  ;;  %s2091_s26 = sshll.u32 %s2844_s16, 9 }
  0x41   : > { %s3027_s25 = scalar_lea.hbm %s3443_s0, %s2091_s26  ;;  %s336_s22 = scalar_lea.vmem [#allocation2], %s2034_s30 }
  0x42   : > { %s343_s28 = sshll.u32 %s336_s22, 4  ;;  %p3031_p11 = pnand %p2551_p9, %p44_p10  ;;  %s3029_s28 = int_to_ptr.vmem [resolvable:$true] %s343_s28 }
  0x43   : > { %s3035_s5 = scalar_lea.sflag [#allocation3], %s332_s29  ;;  %s2740_s9 = scalar_lea.hbm %s3027_s25, 512 }
  0x44   : > { %p2741_p1 = scmp.ne.s32.totalorder %s3027_s25, %s2740_s9  ;;  %p2742_p2 = pneg %p3031_p11 }
  0x45   : > { %s2745_s11 = scalar_lea.hbm %s3443_s0, 1024  ;;  %p2746_p8 = scmp.lt.u32.totalorder %s3027_s25, %s3443_s0 }
  0x46   : > { %p2743_p4 = pnand %p2742_p2, %p2741_p1  ;;  %p2747_p12 = scmp.lt.u32.totalorder %s2745_s11, %s2740_s9 }
  0x47   : > { %p2749_p0 = scmp.lt.u32.totalorder %s2740_s9, %s3027_s25 }
  0x48   : > { %p2744_p6 = pneg %p2743_p4  ;;  %p2748_p13 = por %p2747_p12, %p2746_p8 }
  0x4a   : > { %p2750_p3 = por %p2749_p0, %p2748_p13 }
  0x4c   : > { %p2751_p5 = pnand %p2750_p3, %p2744_p6 }
  0x4e   : > { %2754 = shalt.err (!%p2751_p5)
}
  0x4f   : > { %s2755_s29 = scalar_lea.vmem %s3029_s28, 512  ;;  %s2850_s30 = smov [#allocation2]  }
  0x50   : > { %p2756_p9 = scmp.ne.s32.totalorder %s3029_s28, %s2755_s29  ;;  %s2760_s26 = sshll.u32 %s2850_s30, 4  ;;  %s2761_s26 = int_to_ptr.vmem [resolvable:$false] %s2760_s26 }
  0x51   : > { %s2762_s12 = scalar_lea.vmem %s2761_s26, 1024  ;;  %p2763_p4 = scmp.lt.s32.totalorder %s3029_s28, %s2761_s26 }
  0x52   : > { %p2758_p10 = pnand %p2756_p9, %p2742_p2  ;;  %p2764_p8 = scmp.lt.s32.totalorder %s2762_s12, %s2755_s29 }
  0x54   : > { %p2759_p1 = pneg %p2758_p10  ;;  %p2765_p12 = por %p2764_p8, %p2763_p4 }
  0x56   : > { %p2766_p13 = pnand %p2765_p12, %p2759_p1 }
  0x58   : > { %2769 = shalt.err (!%p2766_p13)
}
  0x59   : > { %s3470_s9 = smov 8   ;;  %s3471_s11 = smov 128  }
  0x5a   : > { %2544 = dma.hbm_to_vmem [thread:$0]  (!%p3031_p11), %s3027_s25, 512, %s3029_s28, %s3035_s5, %s3471_s11, %s3471_s11, %s3470_s9  }
  0x5b   : > { %p3472_p2 = scmp.ne.s32.totalorder %s3463_s21, 0 }
  0x5c   : > { %s3069_s22 = sand.u32 (!%p3472_p2), 1, %s2836_s14   ;;  %p3473_p6 = scmp.ne.s32.totalorder (!%p3472_p2), %s3461_s19, 0 }
  0x5d   : > { %355 = sbr.rel (%p3472_p2) target bundleno = 2666 (0xa6a), region = 60  ;;  %s2038_s29 = sshll.u32 (!%p3472_p2), %s3069_s22, 5 }
  0x5e   : > { %s358_s30 = scalar_lea.sflag (!%p3472_p2), [#allocation3], %s3069_s22  ;;  %s3075_s18 = scalar_lea.vmem (!%p3472_p2), [#allocation2], %s2038_s29 }
  0x64   : > { %2815 = dma.done.wait (%p3473_p6), %s358_s30, 512  }
  0x65   : > { %2817 = vsyncadd (%p3473_p6), %s358_s30, 4294966784  ;;  %p3474_p11 = scmp.eq.s32.totalorder %s2931_s17, 0 }
  0x67   : > { %2819 = dma.done.wait (%p3474_p11), [#allocation7], 2048   ;;  %p3475_p0 = pmov %p3474_p11 }
  0x69   : > { %2821 = vsyncadd (%p3475_p0), [#allocation7], 4294965248  ;;  %p3476_p3 = pmov %p3475_p0 }
  0x6a   : > { %p3477_p5 = pmov %p3475_p0 }
  0x6b   : > { %2823 = dma.done.wait (%p3476_p3), [#allocation5], 16  }
  0x6c   : > { %2825 = vsyncadd (%p3477_p5), [#allocation5], 4294967280 }
  0x6d   : > { %374 = sfence }
  0x6e   : > { %v419_v0 = vld [vmem:[%s3446_s3] sm:$0xff]  ;;  %v420_v1 = vld [vmem:[%s3446_s3 + $0x8] sm:$0xff]  ;;  %v421_v2 = vld [vmem:[%s3446_s3 + $0x10] sm:$0xff]  ;;  %vm881_vm0 = vcmask 523264   ;;  %vm740_vm2 = vcmask 130048   ;;  %s2851_s30 = smov 64  }
  0x6f   : > { %v2378_v3 = vpack.c.bf16 %v420_v1, %v419_v0  ;;  %v422_v4 = vld [vmem:[%s3446_s3 + $0x18] sm:$0xff]  ;;  %v423_v6 = vld [vmem:[%s3446_s3 + $0x20] sm:$0xff]  ;;  %v424_v7 = vld [vmem:[%s3446_s3 + $0x28] sm:$0xff]  ;;  %s2042_s25 = sld [smem:[#allocation8 + $0x1]]  ;;  %s413_s28 = sld [smem:[#allocation8]] }
  0x70   : > { %v2382_v5 = vpack.c.bf16 %v422_v4, %v421_v2  ;;  %v2386_v8 = vpack.c.bf16 %v424_v7, %v423_v6  ;;  %v425_v9 = vld [vmem:[%s3446_s3 + $0x30] sm:$0xff]  ;;  %v426_v10 = vld [vmem:[%s3446_s3 + $0x38] sm:$0xff]  ;;  %v415_v11 = vld [vmem:[%s3075_s18] sm:$0xff]  ;;  %s3382_s26 = scalar_lea.vmem [#allocation9], %s2038_s29  ;;  %s2093_s29 = sshll.u32 %s2931_s17, 9 }
  0x71   : > { %2379 = vmatprep.subr.bf16.mxu0 %v2378_v3  ;;  %2226 = vmatprep.mubr.f32.mxu0 %v415_v11  ;;  %v527_v12 = vld [vmem:[#allocation6] sm:$0xff]  ;;  %v528_v13 = vld [vmem:[#allocation6 + $0x8] sm:$0xff]  ;;  %v529_v14 = vld [vmem:[#allocation6 + $0x10] sm:$0xff]  ;;  %v2390_v20 = vpack.c.bf16 %v426_v10, %v425_v9  ;;  %s1934_s12 = sshll.u32 %s3382_s26, 4  ;;  %s2852_s5 = smov [#allocation9]   ;;  %s3398_s12 = int_to_ptr.vmem [resolvable:$true] %s1934_s12 }
  0x72   : > { %2381 = vmatpush3.bf16.msra.mxu0 %v2378_v3  ;;  %v2410_v15 = vpack.c.bf16 %v528_v13, %v527_v12  ;;  %v530_v16 = vld [vmem:[#allocation6 + $0x18] sm:$0xff]  ;;  %v531_v18 = vld [vmem:[#allocation6 + $0x20] sm:$0xff]  ;;  %v532_v19 = vld [vmem:[#allocation6 + $0x28] sm:$0xff]  ;;  %s2770_s17 = scalar_lea.vmem %s3398_s12, 512  ;;  %s2774_s21 = sshll.u32 %s2852_s5, 4  ;;  %s2775_s21 = int_to_ptr.vmem [resolvable:$false] %s2774_s21 }
  0x73   : > { %2383 = vmatprep.subr.bf16.mxu0 %v2382_v5  ;;  %v2414_v17 = vpack.c.bf16 %v530_v16, %v529_v14  ;;  %v427_v21 = vld [vmem:[%s3446_s3 + $0x40] sm:$0xff]  ;;  %v428_v22 = vld [vmem:[%s3446_s3 + $0x48] sm:$0xff]  ;;  %v2418_v23 = vpack.c.bf16 %v532_v19, %v531_v18  ;;  %v533_v24 = vld [vmem:[#allocation6 + $0x30] sm:$0xff]  ;;  %p2771_p9 = scmp.ne.s32.totalorder %s3398_s12, %s2770_s17  ;;  %s2776_s19 = scalar_lea.vmem %s2775_s21, 1024 }
  0x74   : > { %2411 = vmatprep.subr.bf16.mxu1 %v2410_v15  ;;  %v534_v25 = vld [vmem:[#allocation6 + $0x38] sm:$0xff]  ;;  %v2394_v26 = vpack.c.bf16 %v428_v22, %v427_v21  ;;  %v429_v27 = vld [vmem:[%s3446_s3 + $0x50] sm:$0xff]  ;;  %v535_v30 = vld [vmem:[#allocation6 + $0x40] sm:$0xff]  ;;  %p2777_p4 = scmp.lt.s32.totalorder %s3398_s12, %s2775_s21  ;;  %p2778_p8 = scmp.lt.s32.totalorder %s2776_s19, %s2770_s17 }
  0x75   : > { %2413 = vmatpush3.bf16.msra.mxu1 %v2410_v15  ;;  %v430_v28 = vld [vmem:[%s3446_s3 + $0x58] sm:$0xff]  ;;  %v2422_v29 = vpack.c.bf16 %v534_v25, %v533_v24  ;;  %v536_v31 = vld [vmem:[#allocation6 + $0x48] sm:$0xff]  ;;  %v431_v33 = vld [vmem:[%s3446_s3 + $0x60] sm:$0xff]  ;;  %p2772_p10 = pnand %p2771_p9, %p3014_p7 }
  0x76   : > { %2385 = vmatpush3.bf16.msra.mxu0 %v2382_v5  ;;  %2415 = vmatprep.subr.bf16.mxu1 %v2414_v17  ;;  %v2398_v32 = vpack.c.bf16 %v430_v28, %v429_v27  ;;  %v432_v34 = vld [vmem:[%s3446_s3 + $0x68] sm:$0xff]  ;;  %v2426_v35 = vpack.c.bf16 %v536_v31, %v535_v30  ;;  %v537_v36 = vld [vmem:[#allocation6 + $0x50] sm:$0xff]  ;;  %v538_v37 = vld [vmem:[#allocation6 + $0x58] sm:$0xff]  ;;  %p2779_p12 = por %p2778_p8, %p2777_p4 }
  0x77   : > { %2387 = vmatprep.subr.bf16.mxu0 %v2386_v8  ;;  %v2402_v38 = vpack.c.bf16 %v432_v34, %v431_v33  ;;  %v433_v39 = vld [vmem:[%s3446_s3 + $0x70] sm:$0xff]  ;;  %v434_v40 = vld [vmem:[%s3446_s3 + $0x78] sm:$0xff]  ;;  %v2430_v41 = vpack.c.bf16 %v538_v37, %v537_v36  ;;  %v539_v42 = vld [vmem:[#allocation6 + $0x60] sm:$0xff]  ;;  %p2773_p1 = pneg %p2772_p10 }
  0x78   : > { %v540_v43 = vld [vmem:[#allocation6 + $0x68] sm:$0xff]  ;;  %v2406_v44 = vpack.c.bf16 %v434_v40, %v433_v39  ;;  %v541_v47 = vld [vmem:[#allocation6 + $0x70] sm:$0xff]  ;;  %v542_v48 = vld [vmem:[#allocation6 + $0x78] sm:$0xff] }
  0x79   : > { %2417 = vmatpush3.bf16.msra.mxu1 %v2414_v17  ;;  %v2434_v45 = vpack.c.bf16 %v540_v43, %v539_v42  ;;  %v416_v46 = vld [vmem:[%s3075_s18 + $0x8] sm:$0xff]  ;;  %v2438_v49 = vpack.c.bf16 %v542_v48, %v541_v47  ;;  %v417_v50 = vld [vmem:[%s3075_s18 + $0x10] sm:$0xff]  ;;  %v418_v51 = vld [vmem:[%s3075_s18 + $0x18] sm:$0xff]  ;;  %s1920_s18 = scalar_lea.sflag [#allocation4], %s3069_s22  ;;  %p2780_p13 = pnand %p2779_p12, %p2773_p1 }
  0x7a   : > { %2389 = vmatpush3.bf16.msra.mxu0 %v2386_v8  ;;  %2419 = vmatprep.subr.bf16.mxu1 %v2418_v23  ;;  %v639_v52 = vld [vmem:[%s3445_s2] sm:$0xff]  ;;  %v640_v53 = vld [vmem:[%s3445_s2 + $0x8] sm:$0xff]  ;;  %v641_v54 = vld [vmem:[%s3445_s2 + $0x10] sm:$0xff] }
  0x7b   : > { %2391 = vmatprep.subr.bf16.mxu0 %v2390_v20  ;;  %v642_v55 = vld [vmem:[%s3445_s2 + $0x18] sm:$0xff]  ;;  %v2442_v56 = vpack.c.bf16 %v640_v53, %v639_v52  ;;  %v643_v58 = vld [vmem:[%s3445_s2 + $0x20] sm:$0xff]  ;;  %v644_v59 = vld [vmem:[%s3445_s2 + $0x28] sm:$0xff] }
  0x7c   : > { %v2446_v57 = vpack.c.bf16 %v642_v55, %v641_v54  ;;  %v2450_v60 = vpack.c.bf16 %v644_v59, %v643_v58  ;;  %v645_v61 = vld [vmem:[%s3445_s2 + $0x30] sm:$0xff]  ;;  %v646_v62 = vld [vmem:[%s3445_s2 + $0x38] sm:$0xff]  ;;  %v2043_v0 = vld [vmem:[%s3447_s4] ss:$0 sm:$0xff] }
  0x7d   : > { %2421 = vmatpush3.bf16.msra.mxu1 %v2418_v23  ;;  %v2454_v63 = vpack.c.bf16 %v646_v62, %v645_v61  ;;  %vm3182_vm1 = vmpackc.low %vm881_vm0, %vm881_vm0  ;;  %v647_v8 = vld [vmem:[%s3445_s2 + $0x40] sm:$0xff]  ;;  %v648_v9 = vld [vmem:[%s3445_s2 + $0x48] sm:$0xff] }
  0x7e   : > { %2393 = vmatpush3.bf16.msra.mxu0 %v2390_v20  ;;  %2423 = vmatprep.subr.bf16.mxu1 %v2422_v29  ;;  %v2458_v10 = vpack.c.bf16 %v648_v9, %v647_v8  ;;  %v649_v11 = vld [vmem:[%s3445_s2 + $0x50] sm:$0xff]  ;;  %v650_v12 = vld [vmem:[%s3445_s2 + $0x58] sm:$0xff]  ;;  %v651_v14 = vld [vmem:[%s3445_s2 + $0x60] sm:$0xff] }
  0x7f   : > { %2395 = vmatprep.subr.bf16.mxu0 %v2394_v26  ;;  %v2462_v13 = vpack.c.bf16 %v650_v12, %v649_v11  ;;  %v652_v15 = vld [vmem:[%s3445_s2 + $0x68] sm:$0xff]  ;;  %v653_v16 = vld [vmem:[%s3445_s2 + $0x70] sm:$0xff]  ;;  %v654_v18 = vld [vmem:[%s3445_s2 + $0x78] sm:$0xff] }
  0x80   : > { %v2466_v17 = vpack.c.bf16 %v652_v15, %v651_v14  ;;  %v2470_v19 = vpack.c.bf16 %v654_v18, %v653_v16  ;;  %v2044_v25 = vld [vmem:[%s3449_s6] ss:$0 sm:$0xff]  ;;  %v3246_v9 = vld [vmem:[%s3444_s1 + $0x8] sm:$0xff] }
  0x81   : > { %2425 = vmatpush3.bf16.msra.mxu1 %v2422_v29  ;;  %v3241_v8 = vld [vmem:[%s3444_s1] sm:$0xff] }
  0x82   : > { %2397 = vmatpush3.bf16.msra.mxu0 %v2394_v26  ;;  %2427 = vmatprep.subr.bf16.mxu1 %v2426_v35 }
  0x83   : > { %2399 = vmatprep.subr.bf16.mxu0 %v2398_v32 }
  0x85   : > { %2429 = vmatpush3.bf16.msra.mxu1 %v2426_v35 }
  0x86   : > { %2401 = vmatpush3.bf16.msra.mxu0 %v2398_v32  ;;  %2431 = vmatprep.subr.bf16.mxu1 %v2430_v41 }
  0x87   : > { %2403 = vmatprep.subr.bf16.mxu0 %v2402_v38 }
  0x89   : > { %2433 = vmatpush3.bf16.msra.mxu1 %v2430_v41 }
  0x8a   : > { %2405 = vmatpush3.bf16.msra.mxu0 %v2402_v38  ;;  %2435 = vmatprep.subr.bf16.mxu1 %v2434_v45 }
  0x8b   : > { %2407 = vmatprep.subr.bf16.mxu0 %v2406_v44 }
  0x8d   : > { %2437 = vmatpush3.bf16.msra.mxu1 %v2434_v45 }
  0x8e   : > { %2409 = vmatpush3.bf16.msra.mxu0 %v2406_v44  ;;  %2439 = vmatprep.subr.bf16.mxu1 %v2438_v49 }
  0x8f   : > { %2443 = vmatprep.subr.bf16.mxu0 %v2442_v56 }
  0x91   : > { %2227 = vmatmul.mubr.f32.vlgmr.msra.gmra.mrb[0].mxu0 %v416_v46  ;;  %2441 = vmatpush3.bf16.msra.mxu1 %v2438_v49 }
  0x92   : > { %2229 = vmatprep.mubr.f32.mxu0 %v417_v50  ;;  %2445 = vmatpush3.bf16.msra.mxu0 %v2442_v56 }
  0x93   : > { %2447 = vmatprep.subr.bf16.mxu0 %v2446_v57 }
  0x95   : > { %2230 = vmatmul.mubr.f32.gmra.mrb[2].mxu0 %v418_v51 }
  0x96   : > { %2449 = vmatpush3.bf16.msra.mxu0 %v2446_v57 }
  0x97   : > { %2451 = vmatprep.subr.bf16.mxu0 %v2450_v60 }
  0x9a   : > { %2453 = vmatpush3.bf16.msra.mxu0 %v2450_v60 }
  0x9b   : > { %2455 = vmatprep.subr.bf16.mxu0 %v2454_v63 }
  0x9e   : > { %2457 = vmatpush3.bf16.msra.mxu0 %v2454_v63 }
  0x9f   : > { %2459 = vmatprep.subr.bf16.mxu0 %v2458_v10 }
  0xa2   : > { %2461 = vmatpush3.bf16.msra.mxu0 %v2458_v10 }
  0xa3   : > { %2463 = vmatprep.subr.bf16.mxu0 %v2462_v13 }
  0xa6   : > { %2465 = vmatpush3.bf16.msra.mxu0 %v2462_v13 }
  0xa7   : > { %2467 = vmatprep.subr.bf16.mxu0 %v2466_v17 }
  0xaa   : > { %2469 = vmatpush3.bf16.msra.mxu0 %v2466_v17 }
  0xab   : > { %2471 = vmatprep.subr.bf16.mxu0 %v2470_v19 }
  0xae   : > { %2473 = vmatpush3.bf16.msra.mxu0 %v2470_v19 }
 0x164   : > { %v2228_v1 = vpop.f32.mrb[0].mxu0 }
 0x165   : > { %v3168_v2 = vadd.f32 %v2228_v1, %v2043_v0  ;;  %v508_v3 = vpop.f32.mrb[1].mxu0 }
 0x166   : > { %v3170_v4 = vadd.f32 %v2043_v0, %v508_v3 }
 0x168   : > { %v3174_v5 = vpack.c.bf16 %v3168_v2, %v3170_v4  ;;  %2264 = vmatprep.mubr.f32.mxu1 %v3170_v4  ;;  %v2595_v6 = vpack.i.bf16 %v3168_v2, %v3170_v4  ;;  %v2231_v20 = vpop.f32.mrb[2].mxu0 }
 0x169   : > { %2265 = vmatmul.mubr.f32.vlgmr.msra.gmra.mrb[0].mxu1 %v3168_v2  ;;  %v3215_v21 = vadd.f32 %v2231_v20, %v2043_v0  ;;  %v518_v22 = vpop.f32.mrb[3].mxu0 }
 0x16a   : > { %2475 = vmatprep.subr.bf16.mxu1 %v3174_v5  ;;  %v3217_v23 = vadd.f32 %v2043_v0, %v518_v22 }
 0x16b   : > { %2477 = vmatpush3.bf16.msra.mxu1 %v3174_v5 }
 0x16c   : > { %2480 = vmatprep.subr.msk.bf16.mxu1 %vm3182_vm1, %v3174_v5  ;;  %v3221_v24 = vpack.c.bf16 %v3215_v21, %v3217_v23  ;;  %2267 = vmatprep.mubr.f32.mxu1 %v3217_v23 }
 0x16d   : > { %2268 = vmatmul.mubr.f32.gmra.mrb[2].mxu1 %v3215_v21 }
 0x16e   : > { %2504 = vmatprep.subr.msk.bf16.mxu0 %vm3182_vm1, %v3221_v24 }
 0x23c   : > { %v2266_v26 = vpop.f32.mrb[0].mxu1 }
 0x23d   : > { %v622_v27 = vadd.f32 %v2266_v26, %v2044_v25  ;;  %v616_v28 = vpop.f32.mrb[1].mxu1 }
 0x23e   : > { %v617_v29 = vadd.f32 %v2044_v25, %v616_v28 }
 0x240   : > { %2605 = vtanh.f32 %v617_v29  ;;  %v2269_v32 = vpop.f32.mrb[2].mxu1 }
 0x241   : > { %2607 = vtanh.f32 %v622_v27  ;;  %v632_v33 = vadd.f32 %v2269_v32, %v2044_v25  ;;  %v626_v34 = vpop.f32.mrb[3].mxu1 }
 0x242   : > { %v627_v35 = vadd.f32 %v2044_v25, %v626_v34 }
 0x243   : > { %2609 = vtanh.f32 %v632_v33 }
 0x244   : > { %2611 = vtanh.f32 %v627_v35 }
 0x24a   : > { %v2606_v30 = vpop.eup %2605 }
 0x24b   : > { %v2608_v31 = vpop.eup %2607  ;;  %2302 = vmatprep.mubr.f32.mxu0 %v2606_v30 }
 0x24c   : > { %2303 = vmatmul.mubr.f32.vlgmr.msra.gmra.mrb[4].mxu0 %v2608_v31 }
 0x24d   : > { %2507 = vmatpush3.bf16.xpose.msk.msra.mxu0 %vm3182_vm1, %v3221_v24  ;;  %v2610_v36 = vpop.eup %2609 }
 0x24e   : > { %v2612_v37 = vpop.eup %2611 }
 0x24f   : > { %2305 = vmatprep.mubr.f32.mxu0 %v2612_v37 }
 0x250   : > { %2306 = vmatmul.mubr.f32.gmra.mrb[6].mxu0 %v2610_v36 }
 0x251   : > { %2354 = vmatprep.mubr.msk.f32.mxu0 %vm881_vm0, %v3241_v8 }
 0x254   : > { %2355 = vmatmul.mubr.msk.f32.vlgmr.msra.gmra.mrb[8].mxu0 %vm881_vm0, %v3246_v9 }
 0x255   : > { %2368 = vmatprep.mubr.msk.f32.mxu0 %vm881_vm0, %v3241_v8 }
 0x31f   : > { %v2304_v38 = vpop.f32.mrb[4].mxu0 }
 0x320   : > { %v742_v39 = vsel %vm740_vm2, %v2304_v38, -inf  ;;  %v721_v40 = vpop.f32.mrb[5].mxu0 }
 0x321   : > { %v741_v41 = vsel %vm740_vm2, %v721_v40, -inf }
 0x322   : > { %v743_v42 = vmax.f32 %v741_v41, %v742_v39 }
 0x323   : > { %v2307_v10 = vpop.f32.mrb[6].mxu0 }
 0x324   : > { %v744_v43 = vrot.slane %v743_v42, 4  ;;  %v1341_v11 = vsel %vm740_vm2, %v2307_v10, -inf  ;;  %v731_v12 = vpop.f32.mrb[7].mxu0 }
 0x325   : > { %v1340_v13 = vsel %vm740_vm2, %v731_v12, -inf }
 0x326   : > { %v745_v44 = vmax.f32 %v743_v42, %v744_v43  ;;  %v1342_v14 = vmax.f32 %v1340_v13, %v1341_v11 }
 0x328   : > { %v746_v45 = vrot.slane %v745_v44, 2  ;;  %v1343_v15 = vrot.slane %v1342_v14, 4 }
 0x32a   : > { %v747_v46 = vmax.f32 %v745_v44, %v746_v45  ;;  %v1344_v16 = vmax.f32 %v1342_v14, %v1343_v15 }
 0x32c   : > { %v748_v47 = vrot.slane %v747_v46, 1  ;;  %v1345_v17 = vrot.slane %v1344_v16, 2 }
 0x32e   : > { %v749_v48 = vmax.f32 %v747_v46, %v748_v47  ;;  %v1346_v18 = vmax.f32 %v1344_v16, %v1345_v17 }
 0x330   : > { %v750_v49 = vsub.f32 %v721_v40, %v749_v48  ;;  %v751_v50 = vsub.f32 %v2304_v38, %v749_v48  ;;  %v1347_v19 = vrot.slane %v1346_v18, 1 }
 0x332   : > { %v752_v51 = vmul.f32 1.442695, %v750_v49  ;;  %v754_v52 = vmul.f32 1.442695, %v751_v50  ;;  %v1348_v20 = vmax.f32 %v1346_v18, %v1347_v19 }
 0x334   : > { %2613 = vpow2.f32 %v752_v51  ;;  %v1349_v22 = vsub.f32 %v731_v12, %v1348_v20  ;;  %v1350_v25 = vsub.f32 %v2307_v10, %v1348_v20 }
 0x335   : > { %2615 = vpow2.f32 %v754_v52 }
 0x336   : > { %v1351_v26 = vmul.f32 1.442695, %v1349_v22  ;;  %v1353_v27 = vmul.f32 1.442695, %v1350_v25 }
 0x33e   : > { %v2614_v53 = vpop.eup %2613 }
 0x33f   : > { %v2616_v54 = vpop.eup %2615  ;;  %v756_v55 = vsel %vm740_vm2, %v2614_v53, 0.0 }
 0x340   : > { %v757_v56 = vsel %vm740_vm2, %v2616_v54, 0.0 }
 0x341   : > { %v758_v57 = vadd.f32 %v757_v56, %v756_v55 }
 0x343   : > { %v759_v58 = vrot.slane %v758_v57, 4 }
 0x345   : > { %v760_v59 = vadd.f32 %v759_v58, %v758_v57 }
 0x347   : > { %v761_v60 = vrot.slane %v760_v59, 2 }
 0x349   : > { %v762_v61 = vadd.f32 %v761_v60, %v760_v59  ;;  %v2600_v59 = vpack.i.bf16 %v3215_v21, %v3217_v23  ;;  %v2356_v21 = vpop.f32.mrb[8].mxu0 }
 0x34a   : > { %v1552_v23 = vpop.f32.mrb[9].mxu0  ;;  %v1564_v20 = vsel %vm740_vm2, %v2356_v21, -inf }
 0x34b   : > { %v763_v62 = vrot.slane %v762_v61, 1 }
 0x34d   : > { %v764_v63 = vadd.f32 %v763_v62, %v762_v61 }
 0x34f   : > { %2617 = vrcp.f32 %v764_v63 }
 0x350   : > { %2619 = vpow2.f32 %v1351_v26 }
 0x351   : > { %2621 = vpow2.f32 %v1353_v27 }
 0x359   : > { %v2618_v0 = vpop.eup %2617 }
 0x35a   : > { %v766_v1 = vmul.f32 %v2618_v0, %v2614_v53  ;;  %v767_v3 = vmul.f32 %v2618_v0, %v2616_v54  ;;  %v2620_v30 = vpop.eup %2619 }
 0x35b   : > { %v2622_v31 = vpop.eup %2621  ;;  %v1355_v32 = vsel %vm740_vm2, %v2620_v30, 0.0 }
 0x35c   : > { %768 = vxpose.xlu0.b32.start [1/2] (short) (narrow) %v766_v1, 16  ;;  %v1356_v33 = vsel %vm740_vm2, %v2622_v31, 0.0 }
 0x35d   : > { %v1357_v34 = vadd.f32 %v1356_v33, %v1355_v32 }
 0x35f   : > { %v1358_v35 = vrot.slane %v1357_v34, 4 }
 0x360   : > { %769 = vxpose.xlu0.b32.end [2/2] (short) (narrow) %v767_v3, 16 }
 0x361   : > { %v1359_v36 = vadd.f32 %v1358_v35, %v1357_v34 }
 0x363   : > { %v1360_v37 = vrot.slane %v1359_v36, 2 }
 0x365   : > { %v1361_v38 = vadd.f32 %v1360_v37, %v1359_v36 }
 0x367   : > { %v1362_v39 = vrot.slane %v1361_v38, 1 }
 0x369   : > { %v1363_v40 = vadd.f32 %v1362_v39, %v1361_v38 }
 0x36b   : > { %2623 = vrcp.f32 %v1363_v40 }
 0x375   : > { %v2624_v41 = vpop.eup %2623 }
 0x376   : > { %v3269_v42 = vmul.f32 %v2624_v41, %v2620_v30  ;;  %v3271_v43 = vmul.f32 %v2624_v41, %v2622_v31 }
 0x3dc   : > { %v784_v28 = vpop.trf.xlu0 }
 0x3dd   : > { %2312 = vmatprep.mubr.msk.f32.mxu1 %vm740_vm2, %v784_v28 }
 0x3e0   : > { %v785_v29 = vpop.trf.xlu0 }
 0x3e1   : > { %2313 = vmatmul.mubr.msk.f32.vlgmr.msra.gmra.mrb[4].mxu1 %vm740_vm2, %v785_v29 }
 0x3e2   : > { %2483 = vmatpush3.bf16.xpose.msk.msra.mxu1 %vm3182_vm1, %v3174_v5  ;;  %2319 = vmatprep.mubr.msk.f32.mxu1 %vm881_vm0, %v3241_v8 }
 0x3e3   : > { %2485 = vmatprep.subr.bf16.mxu1 %v3174_v5 }
 0x3e9   : > { %2320 = vmatmul.mubr.msk.f32.vlgmr.msra.gmra.mrb[6].mxu1 %vm881_vm0, %v3246_v9 }
 0x3ea   : > { %2487 = vmatpush3.bf16.msra.mxu1 %v3174_v5 }
 0x4b4   : > { %v3273_v44 = vpop.f32.mrb[4].mxu1 }
 0x4b5   : > { %v3275_v45 = vpop.f32.mrb[5].mxu1 }
 0x4bc   : > { %v2321_v46 = vpop.f32.mrb[6].mxu1 }
 0x4bd   : > { %v960_v47 = vpop.f32.mrb[7].mxu1  ;;  %v972_v48 = vsel %vm740_vm2, %v2321_v46, -inf }
 0x4be   : > { %v969_v5 = vsel %vm740_vm2, %v960_v47, -inf }
 0x4bf   : > { %970 = vmax.xlane.f32.xlu1 %v969_v5 }
 0x4c3   : > { %973 = vmax.xlane.f32.xlu1 %v972_v48 }
 0x54c   : > { %v971_v49 = vpop.xlane.xlu1 %970 }
 0x54d   : > { %v975_v50 = vsub.f32 %v960_v47, %v971_v49 }
 0x54f   : > { %v977_v51 = vmul.f32 1.442695, %v975_v50 }
 0x550   : > { %v974_v52 = vpop.xlane.xlu1 %973 }
 0x551   : > { %2625 = vpow2.f32 %v977_v51  ;;  %v976_v53 = vsub.f32 %v2321_v46, %v974_v52 }
 0x553   : > { %v979_v54 = vmul.f32 1.442695, %v976_v53 }
 0x555   : > { %2627 = vpow2.f32 %v979_v54 }
 0x55b   : > { %v2626_v55 = vpop.eup %2625 }
 0x55c   : > { %v981_v56 = vsel %vm740_vm2, %v2626_v55, 0.0 }
 0x55d   : > { %982 = vadd.xlane.f32.xlu0 %v981_v56 }
 0x55f   : > { %v2628_v57 = vpop.eup %2627 }
 0x560   : > { %v984_v58 = vsel %vm740_vm2, %v2628_v57, 0.0 }
 0x561   : > { %985 = vadd.xlane.f32.xlu1 %v984_v58 }
 0x572   : > { %2596 = vrot.lane.b32.xlu1 %v2595_v6, %s2851_s30 }
 0x576   : > { %2601 = vrot.lane.b32.xlu1 %v2600_v59, %s2851_s30 }
 0x5ea   : > { %v983_v60 = vpop.xlane.xlu0 %982 }
 0x5eb   : > { %2629 = vrcp.f32 %v983_v60 }
 0x5ee   : > { %v986_v61 = vpop.xlane.xlu1 %985 }
 0x5ef   : > { %2631 = vrcp.f32 %v986_v61 }
 0x5f2   : > { %v2597_v62 = vpop.permute.xlu1 %2596 }
 0x5f3   : > { %v2599_v63 = vunpack.i.h.bf16 %v2597_v62  ;;  %v2598_v0 = vunpack.i.l.bf16 %v2597_v62 }
 0x5f5   : > { %v2630_v1 = vpop.eup %2629  ;;  %v2488_v3 = vpack.c.bf16 %v2599_v63, %v2598_v0 }
 0x5f6   : > { %v2602_v10 = vpop.permute.xlu1 %2601  ;;  %v988_v11 = vmul.f32 %v2630_v1, %v2626_v55 }
 0x5f7   : > { %v2604_v12 = vunpack.i.h.bf16 %v2602_v10  ;;  %v2603_v13 = vunpack.i.l.bf16 %v2602_v10  ;;  %2490 = vmatprep.subr.msk.bf16.mxu1 %vm3182_vm1, %v2488_v3 }
 0x5f8   : > { %2326 = vmatprep.mubr.msk.f32.mxu1 %vm740_vm2, %v988_v11 }
 0x5f9   : > { %v2632_v2 = vpop.eup %2631  ;;  %v3291_v4 = vpack.c.bf16 %v2604_v12, %v2603_v13 }
 0x5fa   : > { %v990_v6 = vmul.f32 %v2632_v2, %v2628_v57 }
 0x5fb   : > { %2514 = vmatprep.subr.msk.bf16.mxu0 %vm3182_vm1, %v3291_v4 }
 0x5fc   : > { %2327 = vmatmul.mubr.msk.f32.vlgmr.msra.gmra.mrb[8].mxu1 %vm740_vm2, %v990_v6  ;;  %2517 = vmatpush3.bf16.xpose.msk.msra.mxu0 %vm3182_vm1, %v3291_v4 }
 0x5fd   : > { %2493 = vmatpush3.bf16.xpose.msk.msra.mxu1 %vm3182_vm1, %v2488_v3  ;;  %2333 = vmatprep.mubr.msk.f32.mxu1 %vm881_vm0, %v3241_v8 }
 0x5fe   : > { %2495 = vmatprep.subr.bf16.mxu1 %v2488_v3 }
 0x603   : > { %2369 = vmatmul.mubr.msk.f32.vlgmr.msra.gmra.mrb[10].mxu0 %vm881_vm0, %v3246_v9 }
 0x604   : > { %2334 = vmatmul.mubr.msk.f32.vlgmr.msra.gmra.mrb[10].mxu1 %vm881_vm0, %v3246_v9  ;;  %v1561_v9 = vsel %vm740_vm2, %v1552_v23, -inf }
 0x605   : > { %2497 = vmatpush3.bf16.msra.mxu1 %v2488_v3 }
 0x606   : > { %2499 = vmatprep.subr.bf16.mxu1 %v3221_v24 }
 0x6cf   : > { %v3309_v14 = vpop.f32.mrb[8].mxu1 }
 0x6d0   : > { %v3311_v15 = vpop.f32.mrb[9].mxu1 }
 0x6d6   : > { %v2370_v7 = vpop.f32.mrb[10].mxu0 }
 0x6d7   : > { %v2335_v16 = vpop.f32.mrb[10].mxu1  ;;  %v1738_v17 = vpop.f32.mrb[11].mxu0  ;;  %v1750_v25 = vsel %vm740_vm2, %v2370_v7, -inf }
 0x6d8   : > { %v1146_v8 = vpop.f32.mrb[11].mxu1  ;;  %v1158_v18 = vsel %vm740_vm2, %v2335_v16, -inf  ;;  %v1747_v22 = vsel %vm740_vm2, %v1738_v17, -inf }
 0x6d9   : > { %1159 = vmax.xlane.f32.xlu0 %v1158_v18  ;;  %v1155_v19 = vsel %vm740_vm2, %v1146_v8, -inf }
 0x6da   : > { %1156 = vmax.xlane.f32.xlu1 %v1155_v19 }
 0x6dd   : > { %1562 = vmax.xlane.f32.xlu0 %v1561_v9 }
 0x6e1   : > { %1565 = vmax.xlane.f32.xlu0 %v1564_v20 }
 0x6e5   : > { %1748 = vmax.xlane.f32.xlu0 %v1747_v22 }
 0x6e9   : > { %1751 = vmax.xlane.f32.xlu0 %v1750_v25 }
 0x766   : > { %v1160_v26 = vpop.xlane.xlu0 %1159 }
 0x767   : > { %v1162_v27 = vsub.f32 %v2335_v16, %v1160_v26  ;;  %v1157_v32 = vpop.xlane.xlu1 %1156 }
 0x768   : > { %v1161_v35 = vsub.f32 %v1146_v8, %v1157_v32 }
 0x769   : > { %v1165_v28 = vmul.f32 1.442695, %v1162_v27 }
 0x76a   : > { %v1563_v29 = vpop.xlane.xlu0 %1562  ;;  %v1163_v40 = vmul.f32 1.442695, %v1161_v35 }
 0x76b   : > { %2633 = vpow2.f32 %v1165_v28  ;;  %v1567_v30 = vsub.f32 %v1552_v23, %v1563_v29  ;;  %v2059_v28 = vld [vmem:[%s3450_s7] ss:$0 sm:$0xff] }
 0x76d   : > { %v1569_v31 = vmul.f32 1.442695, %v1567_v30 }
 0x76e   : > { %v1566_v33 = vpop.xlane.xlu0 %1565 }
 0x76f   : > { %2635 = vpow2.f32 %v1569_v31  ;;  %v1568_v34 = vsub.f32 %v2356_v21, %v1566_v33 }
 0x771   : > { %v1571_v36 = vmul.f32 1.442695, %v1568_v34 }
 0x772   : > { %v1749_v37 = vpop.xlane.xlu0 %1748 }
 0x773   : > { %2637 = vpow2.f32 %v1571_v36  ;;  %v1753_v38 = vsub.f32 %v1738_v17, %v1749_v37 }
 0x775   : > { %v2634_v39 = vpop.eup %2633  ;;  %v1755_v41 = vmul.f32 1.442695, %v1753_v38 }
 0x776   : > { %v1752_v46 = vpop.xlane.xlu0 %1751  ;;  %v1170_v47 = vsel %vm740_vm2, %v2634_v39, 0.0 }
 0x777   : > { %2639 = vpow2.f32 %v1755_v41  ;;  %v1754_v5 = vsub.f32 %v2370_v7, %v1752_v46  ;;  %1171 = vadd.xlane.f32.xlu0 %v1170_v47  ;;  %v1309_v46 = vstv %s2042_s25 }
 0x778   : > { %2641 = vpow2.f32 %v1163_v40 }
 0x779   : > { %v2636_v48 = vpop.eup %2635  ;;  %v1757_v49 = vmul.f32 1.442695, %v1754_v5 }
 0x77a   : > { %v1573_v50 = vsel %vm740_vm2, %v2636_v48, 0.0 }
 0x77b   : > { %2643 = vpow2.f32 %v1757_v49  ;;  %1574 = vadd.xlane.f32.xlu1 %v1573_v50  ;;  %v1282_v49 = vstv %s413_s28 }
 0x77d   : > { %v2638_v51 = vpop.eup %2637 }
 0x77e   : > { %v1576_v52 = vsel %vm740_vm2, %v2638_v51, 0.0 }
 0x77f   : > { %1577 = vadd.xlane.f32.xlu0 %v1576_v52 }
 0x781   : > { %v2640_v53 = vpop.eup %2639 }
 0x782   : > { %v1759_v54 = vsel %vm740_vm2, %v2640_v53, 0.0  ;;  %v2642_v55 = vpop.eup %2641 }
 0x783   : > { %1760 = vadd.xlane.f32.xlu1 %v1759_v54  ;;  %v1167_v58 = vsel %vm740_vm2, %v2642_v55, 0.0 }
 0x785   : > { %v2644_v56 = vpop.eup %2643 }
 0x786   : > { %v1762_v57 = vsel %vm740_vm2, %v2644_v56, 0.0 }
 0x787   : > { %1763 = vadd.xlane.f32.xlu0 %v1762_v57  ;;  %1168 = vadd.xlane.f32.xlu1 %v1167_v58 }
 0x7ba   : > { %1367 = vxpose.xlu1.b32.start [1/2] (short) (narrow) %v3269_v42, 16 }
 0x7be   : > { %1368 = vxpose.xlu1.b32.end [2/2] (short) (narrow) %v3271_v43, 16 }
 0x804   : > { %v1172_v61 = vpop.xlane.xlu0 %1171 }
 0x805   : > { %2645 = vrcp.f32 %v1172_v61 }
 0x808   : > { %v1575_v59 = vpop.xlane.xlu1 %1574 }
 0x80c   : > { %v1578_v42 = vpop.xlane.xlu0 %1577 }
 0x80f   : > { %v2646_v63 = vpop.eup %2645 }
 0x810   : > { %v1761_v60 = vpop.xlane.xlu1 %1760  ;;  %v1176_v3 = vmul.f32 %v2646_v63, %v2634_v39 }
 0x814   : > { %v1169_v62 = vpop.xlane.xlu1 %1168  ;;  %v1764_v43 = vpop.xlane.xlu0 %1763 }
 0x815   : > { %2647 = vrcp.f32 %v1169_v62 }
 0x816   : > { %2649 = vrcp.f32 %v1575_v59 }
 0x817   : > { %2651 = vrcp.f32 %v1578_v42 }
 0x818   : > { %2653 = vrcp.f32 %v1761_v60 }
 0x819   : > { %2655 = vrcp.f32 %v1764_v43 }
 0x81f   : > { %v2648_v0 = vpop.eup %2647 }
 0x820   : > { %v1174_v1 = vmul.f32 %v2648_v0, %v2642_v55  ;;  %v2650_v11 = vpop.eup %2649 }
 0x821   : > { %v2652_v12 = vpop.eup %2651  ;;  %v1580_v2 = vmul.f32 %v2650_v11, %v2636_v48 }
 0x822   : > { %2340 = vmatprep.mubr.msk.f32.mxu1 %vm740_vm2, %v1174_v1  ;;  %v2654_v6 = vpop.eup %2653  ;;  %v1582_v21 = vmul.f32 %v2652_v12, %v2638_v51 }
 0x823   : > { %2341 = vmatmul.mubr.msk.f32.vlgmr.msra.gmra.mrb[12].mxu1 %vm740_vm2, %v1176_v3  ;;  %v2656_v23 = vpop.eup %2655  ;;  %v1766_v7 = vmul.f32 %v2654_v6, %v2640_v53 }
 0x824   : > { %2501 = vmatpush3.bf16.msra.mxu1 %v3221_v24  ;;  %v1768_v16 = vmul.f32 %v2656_v23, %v2644_v56 }
 0x825   : > { %2509 = vmatprep.subr.bf16.mxu1 %v3221_v24 }
 0x83a   : > { %v1383_v10 = vpop.trf.xlu1 }
 0x83b   : > { %2347 = vmatprep.mubr.msk.f32.mxu1 %vm740_vm2, %v1383_v10 }
 0x83e   : > { %v1384_v13 = vpop.trf.xlu1 }
 0x83f   : > { %2348 = vmatmul.mubr.msk.f32.vlgmr.msra.gmra.mrb[14].mxu1 %vm740_vm2, %v1384_v13 }
 0x840   : > { %2511 = vmatpush3.bf16.msra.mxu1 %v3221_v24  ;;  %2361 = vmatprep.mubr.msk.f32.mxu1 %vm740_vm2, %v1580_v2 }
 0x841   : > { %2519 = vmatprep.subr.bf16.mxu1 %v3291_v4 }
 0x843   : > { %2362 = vmatmul.mubr.msk.f32.vlgmr.msra.gmra.mrb[16].mxu1 %vm740_vm2, %v1582_v21 }
 0x844   : > { %2521 = vmatpush3.bf16.msra.mxu1 %v3291_v4  ;;  %2375 = vmatprep.mubr.msk.f32.mxu1 %vm740_vm2, %v1766_v7  ;;  %v2062_v4 = vld [vmem:[%s3451_s8] ss:$0 sm:$0xff] }
 0x845   : > { %v1303_v25 = vmul.f32 %v2062_v4, %v3275_v45  ;;  %v1304_v26 = vmul.f32 %v3273_v44, %v2062_v4 }
 0x847   : > { %2376 = vmatmul.mubr.msk.f32.vlgmr.msra.gmra.mrb[18].mxu1 %vm740_vm2, %v1768_v16 }
 0x8f6   : > { %v2342_v17 = vpop.f32.mrb[12].mxu1 }
 0x8f7   : > { %1264 = vrot.lane.b32.xlu0 %v2342_v17, %s2851_s30  ;;  %v1251_v24 = vpop.f32.mrb[13].mxu1 }
 0x8fb   : > { %1262 = vrot.lane.b32.xlu0 %v1251_v24, %s2851_s30 }
 0x912   : > { %v3342_v8 = vpop.f32.mrb[14].mxu1 }
 0x913   : > { %v3344_v18 = vpop.f32.mrb[15].mxu1 }
 0x914   : > { %v1882_v27 = vmul.f32 %v2062_v4, %v3344_v18 }
 0x916   : > { %v2363_v19 = vpop.f32.mrb[16].mxu1 }
 0x917   : > { %v1655_v9 = vpop.f32.mrb[17].mxu1 }
 0x91a   : > { %v2377_v20 = vpop.f32.mrb[18].mxu1 }
 0x91b   : > { %v1843_v22 = vpop.f32.mrb[19].mxu1 }
 0x91c   : > { %1854 = vrot.lane.b32.xlu0 %v1843_v22, %s2851_s30 }
 0x920   : > { %1856 = vrot.lane.b32.xlu0 %v2377_v20, %s2851_s30  ;;  %s3396_s30 = scalar_lea.hbm %s3453_s10, %s2093_s29 }
 0x93f   : > { %1305 = vadd.xlane.f32.xlu0 %v1303_v25 }
 0x943   : > { %1307 = vadd.xlane.f32.xlu0 %v1304_v26 }
 0x947   : > { %1884 = vadd.xlane.f32.xlu0 %v1882_v27 }
 0x969   : > { %v1265_v29 = vpop.permute.xlu0 %1264 }
 0x96a   : > { %v3359_v30 = vsel %vm881_vm0, %v3309_v14, %v1265_v29 }
 0x96b   : > { %v1277_v31 = vmul.f32 %v2059_v28, %v3359_v30 }
 0x96d   : > { %1280 = vadd.xlane.f32.xlu1 %v1277_v31  ;;  %v1263_v32 = vpop.permute.xlu0 %1262 }
 0x96e   : > { %v3364_v33 = vsel %vm881_vm0, %v3311_v15, %v1263_v32  ;;  %v1883_v15 = vmul.f32 %v3342_v8, %v2062_v4 }
 0x96f   : > { %v1276_v34 = vmul.f32 %v2059_v28, %v3364_v33 }
 0x971   : > { %1278 = vadd.xlane.f32.xlu0 %v1276_v34 }
 0x98e   : > { %v1855_v35 = vpop.permute.xlu0 %1854 }
 0x98f   : > { %v3372_v14 = vsel %vm881_vm0, %v1655_v9, %v1855_v35 }
 0x990   : > { %v1862_v39 = vmul.f32 %v2059_v28, %v3372_v14 }
 0x992   : > { %v1857_v36 = vpop.permute.xlu0 %1856 }
 0x993   : > { %v3368_v37 = vsel %vm881_vm0, %v2363_v19, %v1857_v36 }
 0x994   : > { %v1863_v38 = vmul.f32 %v2059_v28, %v3368_v37 }
 0x996   : > { %1866 = vadd.xlane.f32.xlu0 %v1863_v38 }
 0x99a   : > { %1864 = vadd.xlane.f32.xlu0 %v1862_v39 }
 0x99e   : > { %1886 = vadd.xlane.f32.xlu0 %v1883_v15 }
 0x9cc   : > { %v1306_v40 = vpop.xlane.xlu0 %1305 }
 0x9cd   : > { %v1310_v5 = vadd.f32 %v1309_v46, %v1306_v40 }
 0x9cf   : > { %v2063_v50 = vmul.f32 -1.442695, %v1310_v5 }
 0x9d0   : > { %v1308_v41 = vpop.xlane.xlu0 %1307 }
 0x9d1   : > { %v1311_v47 = vadd.f32 %v1309_v46, %v1308_v41 }
 0x9d3   : > { %v2064_v48 = vmul.f32 -1.442695, %v1311_v47 }
 0x9d4   : > { %v1885_v51 = vpop.xlane.xlu0 %1884 }
 0x9d5   : > { %2657 = vpow2.f32 %v2064_v48  ;;  %v1888_v13 = vadd.f32 %v1885_v51, %v1309_v46 }
 0x9d6   : > { %2659 = vpow2.f32 %v2063_v50 }
 0x9d7   : > { %v2081_v2 = vmul.f32 -1.442695, %v1888_v13 }
 0x9df   : > { %v2658_v58 = vpop.eup %2657 }
 0x9e0   : > { %v1319_v59 = vadd.f32 1.0, %v2658_v58  ;;  %v2660_v60 = vpop.eup %2659 }
 0x9e1   : > { %v1318_v63 = vadd.f32 1.0, %v2660_v60 }
 0x9fa   : > { %v1281_v52 = vpop.xlane.xlu1 %1280 }
 0x9fb   : > { %v1284_v53 = vadd.f32 %v1282_v49, %v1281_v52 }
 0x9fd   : > { %v2061_v54 = vmul.f32 -1.442695, %v1284_v53 }
 0x9fe   : > { %v1279_v55 = vpop.xlane.xlu0 %1278 }
 0x9ff   : > { %2661 = vpow2.f32 %v2061_v54  ;;  %v1283_v56 = vadd.f32 %v1282_v49, %v1279_v55 }
 0xa01   : > { %v2060_v57 = vmul.f32 -1.442695, %v1283_v56 }
 0xa03   : > { %2663 = vpow2.f32 %v2060_v57 }
 0xa04   : > { %2665 = vrcp.f32 %v1319_v59 }
 0xa09   : > { %v2662_v61 = vpop.eup %2661 }
 0xa0a   : > { %v1292_v62 = vadd.f32 1.0, %v2662_v61 }
 0xa0c   : > { %2667 = vrcp.f32 %v1292_v62 }
 0xa0d   : > { %v2664_v0 = vpop.eup %2663  ;;  %2669 = vrcp.f32 %v1318_v63 }
 0xa0e   : > { %v1291_v1 = vadd.f32 1.0, %v2664_v0  ;;  %v2666_v3 = vpop.eup %2665 }
 0xa10   : > { %2671 = vrcp.f32 %v1291_v1 }
 0xa16   : > { %v2668_v42 = vpop.eup %2667 }
 0xa17   : > { %v1325_v43 = vadd.f32 %v2668_v42, %v2666_v3  ;;  %v2670_v10 = vpop.eup %2669 }
 0xa19   : > { %2673 = vrcp.f32 %v1325_v43 }
 0xa1a   : > { %v2672_v11 = vpop.eup %2671 }
 0xa1b   : > { %v1324_v12 = vadd.f32 %v2672_v11, %v2670_v10 }
 0xa1d   : > { %2675 = vrcp.f32 %v1324_v12 }
 0xa1e   : > { %2677 = vpow2.f32 %v2081_v2 }
 0xa23   : > { %v1867_v6 = vpop.xlane.xlu0 %1866  ;;  %v2674_v21 = vpop.eup %2673 }
 0xa24   : > { %v1869_v23 = vadd.f32 %v1867_v6, %v1282_v49  ;;  %v1329_v7 = vmul.f32 %v2674_v21, %v2668_v42  ;;  %v1333_v16 = vmul.f32 %v2674_v21, %v2666_v3 }
 0xa26   : > { %v1331_v17 = vmul.f32 %v1329_v7, %v3359_v30  ;;  %v1335_v24 = vmul.f32 %v3273_v44, %v1333_v16  ;;  %v2080_v19 = vmul.f32 -1.442695, %v1869_v23 }
 0xa27   : > { %v1865_v9 = vpop.xlane.xlu0 %1864  ;;  %v2676_v20 = vpop.eup %2675 }
 0xa28   : > { %v1868_v22 = vadd.f32 %v1865_v9, %v1282_v49  ;;  %v1337_v4 = vadd.f32 %v1335_v24, %v1331_v17  ;;  %v1328_v25 = vmul.f32 %v2676_v20, %v2672_v11  ;;  %v1332_v26 = vmul.f32 %v2676_v20, %v2670_v10  ;;  %v2678_v34 = vpop.eup %2677 }
 0xa29   : > { %2679 = vpow2.f32 %v2080_v19  ;;  %v1896_v35 = vadd.f32 1.0, %v2678_v34 }
 0xa2a   : > { %v2079_v27 = vmul.f32 -1.442695, %v1868_v22  ;;  %v1330_v28 = vmul.f32 %v1328_v25, %v3364_v33  ;;  %v1334_v29 = vmul.f32 %v1332_v26, %v3275_v45  ;;  %1339 = vst [vmem:[%s3382_s26 + $0x8] sm:$0xff] %v1337_v4 }
 0xa2b   : > { %v1887_v31 = vpop.xlane.xlu0 %1886 }
 0xa2c   : > { %2681 = vpow2.f32 %v2079_v27  ;;  %v1889_v44 = vadd.f32 %v1887_v31, %v1309_v46  ;;  %v1336_v30 = vadd.f32 %v1334_v29, %v1330_v28 }
 0xa2e   : > { %v2082_v32 = vmul.f32 -1.442695, %v1889_v44  ;;  %1338 = vst [vmem:[%s3382_s26] sm:$0xff] %v1336_v30 }
 0xa30   : > { %2683 = vpow2.f32 %v2082_v32 }
 0xa31   : > { %2685 = vrcp.f32 %v1896_v35 }
 0xa33   : > { %v2680_v36 = vpop.eup %2679 }
 0xa34   : > { %v1877_v45 = vadd.f32 1.0, %v2680_v36 }
 0xa36   : > { %v2682_v33 = vpop.eup %2681 }
 0xa37   : > { %v1876_v38 = vadd.f32 1.0, %v2682_v33 }
 0xa39   : > { %2687 = vrcp.f32 %v1876_v38 }
 0xa3a   : > { %v2684_v39 = vpop.eup %2683  ;;  %2689 = vrcp.f32 %v1877_v45 }
 0xa3b   : > { %v1897_v15 = vadd.f32 1.0, %v2684_v39  ;;  %v2686_v40 = vpop.eup %2685 }
 0xa3d   : > { %2691 = vrcp.f32 %v1897_v15 }
 0xa43   : > { %v2688_v41 = vpop.eup %2687 }
 0xa44   : > { %v1902_v46 = vadd.f32 %v2688_v41, %v2686_v40  ;;  %v2690_v47 = vpop.eup %2689 }
 0xa46   : > { %2693 = vrcp.f32 %v1902_v46 }
 0xa47   : > { %v2692_v5 = vpop.eup %2691 }
 0xa48   : > { %v1903_v48 = vadd.f32 %v2692_v5, %v2690_v47 }
 0xa4a   : > { %2695 = vrcp.f32 %v1903_v48 }
 0xa50   : > { %v2694_v49 = vpop.eup %2693 }
 0xa51   : > { %v1906_v50 = vmul.f32 %v2694_v49, %v2688_v41  ;;  %v1910_v51 = vmul.f32 %v2694_v49, %v2686_v40 }
 0xa53   : > { %v1908_v52 = vmul.f32 %v1906_v50, %v3372_v14  ;;  %v1912_v53 = vmul.f32 %v1910_v51, %v3344_v18 }
 0xa54   : > { %v2696_v54 = vpop.eup %2695 }
 0xa55   : > { %v1914_v55 = vadd.f32 %v1912_v53, %v1908_v52  ;;  %v1907_v56 = vmul.f32 %v2696_v54, %v2690_v47  ;;  %v1911_v57 = vmul.f32 %v2696_v54, %v2692_v5 }
 0xa57   : > { %v1909_v58 = vmul.f32 %v1907_v56, %v3368_v37  ;;  %v1913_v59 = vmul.f32 %v3342_v8, %v1911_v57  ;;  %2083 = vst [vmem:[%s3382_s26 + $0x10] sm:$0xff] %v1914_v55 }
 0xa59   : > { %v1915_v18 = vadd.f32 %v1913_v59, %v1909_v58 }
 0xa5b   : > { %2084 = vst [vmem:[%s3382_s26 + $0x18] sm:$0xff] %v1915_v18 }
 0xa5c   : > { %2783 = shalt.err (!%p2780_p13)
}
 0xa5d   : > { %s2784_s25 = scalar_lea.hbm %s3396_s30, 512  ;;  %s2788_s29 = scalar_lea.hbm %s3453_s10, 1024 }
 0xa5e   : > { %p2785_p2 = scmp.ne.s32.totalorder %s3396_s30, %s2784_s25  ;;  %p2789_p0 = scmp.lt.u32.totalorder %s3396_s30, %s3453_s10 }
 0xa5f   : > { %p2790_p3 = scmp.lt.u32.totalorder %s2788_s29, %s2784_s25  ;;  %p2792_p9 = scmp.lt.u32.totalorder %s2784_s25, %s3396_s30 }
 0xa60   : > { %p2786_p6 = pnand %p2785_p2, %p3014_p7 }
 0xa61   : > { %p2791_p5 = por %p2790_p3, %p2789_p0 }
 0xa62   : > { %p2787_p11 = pneg %p2786_p6 }
 0xa63   : > { %p2793_p10 = por %p2792_p9, %p2791_p5 }
 0xa65   : > { %p2794_p1 = pnand %p2793_p10, %p2787_p11 }
 0xa67   : > { %2797 = shalt.err (!%p2794_p1)
}
 0xa68   : > { %s2853_s17 = smov 128   ;;  %s2854_s5 = smov 8  }
 0xa69   : > { %2532 = dma.vmem_to_hbm [thread:$0]  (%p3014_p7), %s3398_s12, 512, %s3396_s30, %s1920_s18, %s2853_s17, %s2853_s17, %s2854_s5  }
 0xa6a PF: > { %s1949_s21 = sand.u32 1, %s2832_s13   ;;  %p3480_p4 = scmp.ne.s32.totalorder %s3462_s20, 0 }
 0xa6b   : > { %p3481_p8 = scmp.ge.s32.totalorder %s2844_s16, 2  ;;  %s1950_s19 = scalar_lea.sflag [#allocation4], %s1949_s21 }
 0xa6d   : > { %p2546_p12 = pnand %p3481_p8, %p3480_p4 }
 0xa6f   : > { %2827 = dma.done.wait (!%p2546_p12), %s1950_s19, 512  }
 0xa70   : > { %2829 = vsyncadd (!%p2546_p12), %s1950_s19, 4294966784  ;;  %p25_p13 = scmp.ge.s32.totalorder %s3004_s23, 4   ;;  %s3482_s13 = smov %s2836_s14 }
 0xa71   : > { %s3483_s14 = smov %s2840_s15  ;;  %s3484_s15 = smov %s3020_s24 }
 0xa72   : > { %s3485_s16 = smov %s3004_s23  ;;  %27 = sbr.rel (!%p25_p13) target bundleno = 10 (0xa), region = 115 }
 0xa79   :  { %1955 = vsyncpa [#allocation3], 1 }
 0xa7a   :  { %1957 = vsyncpa [#allocation3 + $0x1], 1 }
 0xa7b   :  { %1958 = vsyncpa [#allocation7], 1 }
 0xa7c   :  { %1959 = vsyncpa [#allocation4], 1 }
 0xa7d   :  { %1961 = vsyncpa [#allocation4 + $0x1], 1 }
 0xa7e   :  { %1962 = vsyncpa [#allocation5], 1 }
 0xa7f   :  { %1964 = vsyncpa [#allocation5 + $0x1], 1 }

</bundles_post_ra>
